<compile_context>
chip_gen: v5e
topology: v5e:2x2
jax: 0.10.0
libtpu: 0.0.40
codegen_flags: <defaults>
</compile_context>

<pallas_src>
import math
import functools

import jax
import jax.numpy as jnp
from jax.experimental import pallas as pl
from jax.experimental.pallas import tpu as pltpu


# ----------------------------- Fused flash-MHA kernel ------------------------
def _mha_flash_kernel(xq_ref, xkv_ref, wq_ref, bq_ref, wk_ref, bk_ref,
                      wv_ref, bv_ref, wo_ref, bo_ref, o_ref,
                      q_buf, m_buf, l_buf, acc_buf, *,
                      num_q_heads, num_kv_heads, d_k, tq, tk):
    qi = pl.program_id(1)
    ki = pl.program_id(2)
    nk = pl.num_programs(2)
    q_per_k = num_q_heads // num_kv_heads
    neg_big = jnp.float32(-1e30)
    d_model = o_ref.shape[-1]

    # ---- first kv tile of this (batch, q-tile): project Q, init m/l/acc -----
    @pl.when(ki == 0)
    def _init():
        xq = xq_ref[0]                                            # (tq, D) bf16
        for h in range(num_q_heads):
            qh = jnp.dot(xq, wq_ref[h], preferred_element_type=jnp.float32)
            # scale (1/sqrt(d_k)) is already folded into wq/bq host-side
            q_buf[h] = (qh + bq_ref[h]).astype(jnp.bfloat16)
        m_buf[...] = jnp.full_like(m_buf, -jnp.inf)
        l_buf[...] = jnp.zeros_like(l_buf)
        acc_buf[...] = jnp.zeros_like(acc_buf)

    # ---- skip kv tiles that are entirely in the causal future ---------------
    @pl.when(ki * tk <= qi * tq + (tq - 1))
    def _compute():
        xkv = xkv_ref[0]                                          # (tk, D) bf16
        # per-tile causal mask from global tile offsets
        rows = qi * tq + jax.lax.broadcasted_iota(jnp.int32, (tq, tk), 0)
        cols = ki * tk + jax.lax.broadcasted_iota(jnp.int32, (tq, tk), 1)
        mask_add = jnp.where(cols <= rows, jnp.float32(0.0), neg_big)

        for kvh in range(num_kv_heads):
            kh = (jnp.dot(xkv, wk_ref[kvh], preferred_element_type=jnp.float32)
                  + bk_ref[kvh]).astype(jnp.bfloat16)             # (tk, d_k)
            vh = (jnp.dot(xkv, wv_ref[kvh], preferred_element_type=jnp.float32)
                  + bv_ref[kvh]).astype(jnp.bfloat16)             # (tk, d_k)
            for g in range(q_per_k):
                h = kvh * q_per_k + g                 # GQA: shared kv head
                s = jnp.dot(q_buf[h], kh.T,
                            preferred_element_type=jnp.float32) + mask_add
                m_prev = m_buf[h]                                 # (tq, 1)
                m_new = jnp.maximum(m_prev, jnp.max(s, axis=-1, keepdims=True))
                alpha = jnp.exp(m_prev - m_new)
                p = jnp.exp(s - m_new)
                l_buf[h] = alpha * l_buf[h] + jnp.sum(p, axis=-1, keepdims=True)
                acc_buf[h] = alpha * acc_buf[h] + jnp.dot(
                    p.astype(jnp.bfloat16), vh,
                    preferred_element_type=jnp.float32)
                m_buf[h] = m_new

    # ---- last kv tile: normalize and fold each head into the W_out matmul ---
    @pl.when(ki == nk - 1)
    def _finalize():
        out = jnp.zeros((tq, d_model), jnp.float32)
        for h in range(num_q_heads):
            o_h = acc_buf[h] * pl.reciprocal(l_buf[h], approx=True)  # (tq, d_k)
            out = out + jnp.dot(o_h.astype(jnp.bfloat16), wo_ref[h],
                                preferred_element_type=jnp.float32)
        out = out + bo_ref[...]
        o_ref[0] = out.astype(o_ref.dtype)


def mha_forward(x, wq_h, bq_h, wk_h, bk_h, wv_h, bv_h, wo_h, bo_2d, *,
                num_q_heads, num_kv_heads, d_k, tq=None, tk=None):
    """x: (B, S, D). Per-head weights: wq_h (H,D,d_k), wk_h/wv_h (Hkv,D,d_k),
    wo_h (H,d_k,D). Returns (B, S, D)."""
    B, S, D = x.shape
    if tq is None:
        tq = min(S, 128)
    if tk is None:
        tk = min(S, 128)
    assert S % tq == 0 and S % tk == 0
    nq, nk = S // tq, S // tk

    x_bf = x.astype(jnp.bfloat16)   # bf16 MXU inputs, halves x HBM traffic

    kernel = functools.partial(
        _mha_flash_kernel,
        num_q_heads=num_q_heads, num_kv_heads=num_kv_heads,
        d_k=d_k, tq=tq, tk=tk)

    def wspec(shape):
        return pl.BlockSpec(shape, lambda b, qi, ki, _n=len(shape): (0,) * _n)

    return pl.pallas_call(
        kernel,
        out_shape=jax.ShapeDtypeStruct((B, S, D), x.dtype),
        grid=(B, nq, nk),
        in_specs=[
            pl.BlockSpec((1, tq, D), lambda b, qi, ki: (b, qi, 0)),  # x (q rows)
            pl.BlockSpec((1, tk, D), lambda b, qi, ki: (b, ki, 0)),  # x (kv rows)
            wspec(wq_h.shape), wspec(bq_h.shape),                    # W_q, b_q
            wspec(wk_h.shape), wspec(bk_h.shape),                    # W_k, b_k
            wspec(wv_h.shape), wspec(bv_h.shape),                    # W_v, b_v
            wspec(wo_h.shape), wspec(bo_2d.shape),                   # W_out, b_out
        ],
        out_specs=pl.BlockSpec((1, tq, D), lambda b, qi, ki: (b, qi, 0)),
        scratch_shapes=[
            pltpu.VMEM((num_q_heads, tq, d_k), jnp.bfloat16),   # per-head Q tile
            pltpu.VMEM((num_q_heads, tq, 1), jnp.float32),      # running max m
            pltpu.VMEM((num_q_heads, tq, 1), jnp.float32),      # running sum l
            pltpu.VMEM((num_q_heads, tq, d_k), jnp.float32),    # output acc
        ],
        compiler_params=pltpu.CompilerParams(
            dimension_semantics=("parallel", "parallel", "arbitrary"),
            vmem_limit_bytes=32 * 1024 * 1024,
        ),
    )(x_bf, x_bf, wq_h, bq_h, wk_h, bk_h, wv_h, bv_h, wo_h, bo_2d)


# ----------------------------- Module wrapper --------------------------------
class MultiHeadAttentionPallas:
    def __init__(self, d_model, num_heads, num_query_heads_per_key, key):
        assert d_model % num_heads == 0
        assert num_heads % num_query_heads_per_key == 0
        # reference module shape consistency requires num_heads == q_per_k**2
        assert num_heads == num_query_heads_per_key ** 2

        self.d_model = d_model
        self.num_q_heads = num_heads
        self.d_k = d_model // num_heads
        self.q_per_k = num_query_heads_per_key
        self.num_kv_heads = num_heads // num_query_heads_per_key
        d_kv = self.num_kv_heads * self.d_k

        ks = jax.random.split(key, 8)

        def init_linear(kw, kb, d_in, d_out):
            bound = 1.0 / math.sqrt(d_in)
            w = jax.random.uniform(kw, (d_in, d_out), jnp.float32, -bound, bound)
            b = jax.random.uniform(kb, (d_out,), jnp.float32, -bound, bound)
            return w, b

        self.wq, self.bq = init_linear(ks[0], ks[1], d_model, d_model)
        self.wk, self.bk = init_linear(ks[2], ks[3], d_model, d_kv)
        self.wv, self.bv = init_linear(ks[4], ks[5], d_model, d_kv)
        self.wo, self.bo = init_linear(ks[6], ks[7], d_model, d_model)

        H, Hkv, d_k = self.num_q_heads, self.num_kv_heads, self.d_k
        scale = 1.0 / math.sqrt(d_k)

        # Host-side kernel parameter prep:
        #  * fold the softmax scale into W_q / b_q,
        #  * per-head layouts so in-kernel head slicing is on the free leading
        #    axis (no lane-axis cuts inside an (8,128) tile),
        #  * bf16 weights for the MXU (biases stay f32, added post-accumulation).
        self.wq_h = jnp.transpose((self.wq * scale).reshape(d_model, H, d_k),
                                  (1, 0, 2)).astype(jnp.bfloat16)
        self.bq_h = (self.bq * scale).reshape(H, 1, d_k)
        self.wk_h = jnp.transpose(self.wk.reshape(d_model, Hkv, d_k),
                                  (1, 0, 2)).astype(jnp.bfloat16)
        self.bk_h = self.bk.reshape(Hkv, 1, d_k)
        self.wv_h = jnp.transpose(self.wv.reshape(d_model, Hkv, d_k),
                                  (1, 0, 2)).astype(jnp.bfloat16)
        self.bv_h = self.bv.reshape(Hkv, 1, d_k)
        self.wo_h = self.wo.reshape(H, d_k, d_model).astype(jnp.bfloat16)
        self.bo_2d = self.bo.reshape(1, d_model)

    def __call__(self, x):
        return mha_forward(
            x, self.wq_h, self.bq_h, self.wk_h, self.bk_h,
            self.wv_h, self.bv_h, self.wo_h, self.bo_2d,
            num_q_heads=self.num_q_heads,
            num_kv_heads=self.num_kv_heads,
            d_k=self.d_k,
        )


# ----------------------------- Pure-JAX reference (for self-check) -----------
def reference(mha, x):
    B, S, D = x.shape
    H, d_k, Hkv = mha.num_q_heads, mha.d_k, mha.num_kv_heads
    x2d = x.reshape(B * S, D)
    Q = x2d @ mha.wq + mha.bq
    K = x2d @ mha.wk + mha.bk
    V = x2d @ mha.wv + mha.bv
    Q = Q.reshape(B, S, H, d_k).transpose(0, 2, 1, 3)
    K = K.reshape(B, S, Hkv, d_k).transpose(0, 2, 1, 3)
    V = V.reshape(B, S, Hkv, d_k).transpose(0, 2, 1, 3)
    K = jnp.repeat(K, mha.q_per_k, axis=1)
    V = jnp.repeat(V, mha.q_per_k, axis=1)
    s = jnp.einsum("bhqd,bhkd->bhqk", Q, K) / math.sqrt(d_k)
    mask = jnp.tril(jnp.ones((S, S), dtype=bool))
    s = jnp.where(mask[None, None], s, -jnp.inf)
    p = jax.nn.softmax(s, axis=-1)
    y = jnp.einsum("bhqk,bhkd->bhqd", p, V)
    y = y.transpose(0, 2, 1, 3).reshape(B * S, D)
    return (y @ mha.wo + mha.bo).reshape(B, S, D)


if __name__ == "__main__":
    key = jax.random.PRNGKey(0)
    k_param, k_x = jax.random.split(key)

    d_model, num_heads, q_per_k = 32, 4, 2
    B, S = 2, 8

    mha = MultiHeadAttentionPallas(d_model, num_heads, q_per_k, k_param)
    x = jax.random.normal(k_x, (B, S, d_model), dtype=jnp.float32)

    out = jax.block_until_ready(mha(x))
    ref = reference(mha, x)

    assert out.shape == (B, S, d_model)
    # bf16 MXU inputs + approx reciprocal in softmax -> relaxed tolerance vs
    # the exact f32 reference.
    max_err = float(jnp.max(jnp.abs(out - ref)))
    assert jnp.allclose(out, ref, atol=2e-2, rtol=2e-2), max_err

    print("KERNEL_OK")
</pallas_src>

<mosaic_0001>
module attributes {stable_mosaic.version = 11 : i64} {
  func.func @_mha_flash_kernel(%arg0: i32, %arg1: i32, %arg2: i32, %arg3: memref<1x8x32xbf16, #tpu.memory_space<vmem>>, %arg4: memref<1x8x32xbf16, #tpu.memory_space<vmem>>, %arg5: memref<4x32x8xbf16, #tpu.memory_space<vmem>>, %arg6: memref<4x1x8xf32, #tpu.memory_space<vmem>>, %arg7: memref<2x32x8xbf16, #tpu.memory_space<vmem>>, %arg8: memref<2x1x8xf32, #tpu.memory_space<vmem>>, %arg9: memref<2x32x8xbf16, #tpu.memory_space<vmem>>, %arg10: memref<2x1x8xf32, #tpu.memory_space<vmem>>, %arg11: memref<4x8x32xbf16, #tpu.memory_space<vmem>>, %arg12: memref<1x32xf32, #tpu.memory_space<vmem>>, %arg13: memref<1x8x32xf32, #tpu.memory_space<vmem>>, %arg14: memref<4x8x8xbf16, #tpu.memory_space<vmem>>, %arg15: memref<4x8x1xf32, #tpu.memory_space<vmem>>, %arg16: memref<4x8x1xf32, #tpu.memory_space<vmem>>, %arg17: memref<4x8x8xf32, #tpu.memory_space<vmem>>) attributes {dimension_semantics = [#tpu.dimension_semantics<parallel>, #tpu.dimension_semantics<parallel>, #tpu.dimension_semantics<arbitrary>], iteration_bounds = array<i64: 2, 1, 1>, scalar_prefetch = 0 : i64, scratch_operands = 4 : i64, tpu.core_type = #tpu.core_type<tc>, window_params = [{transform_indices = @transform_0, window_bounds = array<i64: 1, 8, 32>}, {transform_indices = @transform_1, window_bounds = array<i64: 1, 8, 32>}, {pipeline_mode = #tpu.pipeline_mode<synchronous>, transform_indices = @transform_2, window_bounds = array<i64: 4, 32, 8>}, {pipeline_mode = #tpu.pipeline_mode<synchronous>, transform_indices = @transform_3, window_bounds = array<i64: 4, 1, 8>}, {pipeline_mode = #tpu.pipeline_mode<synchronous>, transform_indices = @transform_4, window_bounds = array<i64: 2, 32, 8>}, {pipeline_mode = #tpu.pipeline_mode<synchronous>, transform_indices = @transform_5, window_bounds = array<i64: 2, 1, 8>}, {pipeline_mode = #tpu.pipeline_mode<synchronous>, transform_indices = @transform_6, window_bounds = array<i64: 2, 32, 8>}, {pipeline_mode = #tpu.pipeline_mode<synchronous>, transform_indices = @transform_7, window_bounds = array<i64: 2, 1, 8>}, {pipeline_mode = #tpu.pipeline_mode<synchronous>, transform_indices = @transform_8, window_bounds = array<i64: 4, 8, 32>}, {pipeline_mode = #tpu.pipeline_mode<synchronous>, transform_indices = @transform_9, window_bounds = array<i64: 1, 32>}, {transform_indices = @transform_10, window_bounds = array<i64: 1, 8, 32>}]} {
    %c0_i32 = arith.constant 0 : i32
    %0 = arith.cmpi eq, %arg2, %c0_i32 : i32
    %1 = arith.extui %0 : i1 to i32
    %c0_i32_0 = arith.constant 0 : i32
    %2 = arith.cmpi ne, %1, %c0_i32_0 : i32
    scf.if %2 {
      %c0 = arith.constant 0 : index
      %c0_5 = arith.constant 0 : index
      %c0_6 = arith.constant 0 : index
      %12 = vector.load %arg3[%c0, %c0_5, %c0_6] : memref<1x8x32xbf16, #tpu.memory_space<vmem>>, vector<1x8x32xbf16>
      %13 = vector.shape_cast %12 : vector<1x8x32xbf16> to vector<8x32xbf16>
      %c0_7 = arith.constant 0 : index
      %c0_8 = arith.constant 0 : index
      %c0_9 = arith.constant 0 : index
      %14 = vector.load %arg5[%c0_7, %c0_8, %c0_9] : memref<4x32x8xbf16, #tpu.memory_space<vmem>>, vector<1x32x8xbf16>
      %15 = vector.shape_cast %14 : vector<1x32x8xbf16> to vector<32x8xbf16>
      %cst_10 = arith.constant dense<0.000000e+00> : vector<8x8xf32>
      %16 = tpu.matmul %13, %15, %cst_10 {dimension_numbers = #tpu.dot_dimension_numbers<[1], [0], [0], [1], [0, 0, 1, 1], [], []>} : vector<8x32xbf16>, vector<32x8xbf16>, vector<8x8xf32> -> vector<8x8xf32>
      %c0_11 = arith.constant 0 : index
      %c0_12 = arith.constant 0 : index
      %c0_13 = arith.constant 0 : index
      %17 = vector.load %arg6[%c0_11, %c0_12, %c0_13] : memref<4x1x8xf32, #tpu.memory_space<vmem>>, vector<1x1x8xf32>
      %18 = vector.shape_cast %17 : vector<1x1x8xf32> to vector<1x8xf32>
      %19 = vector.broadcast %18 : vector<1x8xf32> to vector<8x8xf32>
      %20 = arith.addf %16, %19 : vector<8x8xf32>
      %21 = arith.truncf %20 : vector<8x8xf32> to vector<8x8xbf16>
      %c0_14 = arith.constant 0 : index
      %c0_15 = arith.constant 0 : index
      %c0_16 = arith.constant 0 : index
      %22 = vector.load %arg14[%c0_14, %c0_15, %c0_16] : memref<4x8x8xbf16, #tpu.memory_space<vmem>>, vector<1x8x8xbf16>
      %23 = vector.shape_cast %22 : vector<1x8x8xbf16> to vector<8x8xbf16>
      %24 = vector.shape_cast %21 : vector<8x8xbf16> to vector<1x8x8xbf16>
      tpu.vector_store %arg14[%c0_14, %c0_15, %c0_16], %24 {strides = array<i32>} : memref<4x8x8xbf16, #tpu.memory_space<vmem>>, vector<1x8x8xbf16>,
      %c1 = arith.constant 1 : index
      %c0_17 = arith.constant 0 : index
      %c0_18 = arith.constant 0 : index
      %25 = vector.load %arg5[%c1, %c0_17, %c0_18] : memref<4x32x8xbf16, #tpu.memory_space<vmem>>, vector<1x32x8xbf16>
      %26 = vector.shape_cast %25 : vector<1x32x8xbf16> to vector<32x8xbf16>
      %cst_19 = arith.constant dense<0.000000e+00> : vector<8x8xf32>
      %27 = tpu.matmul %13, %26, %cst_19 {dimension_numbers = #tpu.dot_dimension_numbers<[1], [0], [0], [1], [0, 0, 1, 1], [], []>} : vector<8x32xbf16>, vector<32x8xbf16>, vector<8x8xf32> -> vector<8x8xf32>
      %c1_20 = arith.constant 1 : index
      %c0_21 = arith.constant 0 : index
      %c0_22 = arith.constant 0 : index
      %28 = vector.load %arg6[%c1_20, %c0_21, %c0_22] : memref<4x1x8xf32, #tpu.memory_space<vmem>>, vector<1x1x8xf32>
      %29 = vector.shape_cast %28 : vector<1x1x8xf32> to vector<1x8xf32>
      %30 = vector.broadcast %29 : vector<1x8xf32> to vector<8x8xf32>
      %31 = arith.addf %27, %30 : vector<8x8xf32>
      %32 = arith.truncf %31 : vector<8x8xf32> to vector<8x8xbf16>
      %c1_23 = arith.constant 1 : index
      %c0_24 = arith.constant 0 : index
      %c0_25 = arith.constant 0 : index
      %33 = vector.load %arg14[%c1_23, %c0_24, %c0_25] : memref<4x8x8xbf16, #tpu.memory_space<vmem>>, vector<1x8x8xbf16>
      %34 = vector.shape_cast %33 : vector<1x8x8xbf16> to vector<8x8xbf16>
      %35 = vector.shape_cast %32 : vector<8x8xbf16> to vector<1x8x8xbf16>
      tpu.vector_store %arg14[%c1_23, %c0_24, %c0_25], %35 {strides = array<i32>} : memref<4x8x8xbf16, #tpu.memory_space<vmem>>, vector<1x8x8xbf16>,
      %c2 = arith.constant 2 : index
      %c0_26 = arith.constant 0 : index
      %c0_27 = arith.constant 0 : index
      %36 = vector.load %arg5[%c2, %c0_26, %c0_27] : memref<4x32x8xbf16, #tpu.memory_space<vmem>>, vector<1x32x8xbf16>
      %37 = vector.shape_cast %36 : vector<1x32x8xbf16> to vector<32x8xbf16>
      %cst_28 = arith.constant dense<0.000000e+00> : vector<8x8xf32>
      %38 = tpu.matmul %13, %37, %cst_28 {dimension_numbers = #tpu.dot_dimension_numbers<[1], [0], [0], [1], [0, 0, 1, 1], [], []>} : vector<8x32xbf16>, vector<32x8xbf16>, vector<8x8xf32> -> vector<8x8xf32>
      %c2_29 = arith.constant 2 : index
      %c0_30 = arith.constant 0 : index
      %c0_31 = arith.constant 0 : index
      %39 = vector.load %arg6[%c2_29, %c0_30, %c0_31] : memref<4x1x8xf32, #tpu.memory_space<vmem>>, vector<1x1x8xf32>
      %40 = vector.shape_cast %39 : vector<1x1x8xf32> to vector<1x8xf32>
      %41 = vector.broadcast %40 : vector<1x8xf32> to vector<8x8xf32>
      %42 = arith.addf %38, %41 : vector<8x8xf32>
      %43 = arith.truncf %42 : vector<8x8xf32> to vector<8x8xbf16>
      %c2_32 = arith.constant 2 : index
      %c0_33 = arith.constant 0 : index
      %c0_34 = arith.constant 0 : index
      %44 = vector.load %arg14[%c2_32, %c0_33, %c0_34] : memref<4x8x8xbf16, #tpu.memory_space<vmem>>, vector<1x8x8xbf16>
      %45 = vector.shape_cast %44 : vector<1x8x8xbf16> to vector<8x8xbf16>
      %46 = vector.shape_cast %43 : vector<8x8xbf16> to vector<1x8x8xbf16>
      tpu.vector_store %arg14[%c2_32, %c0_33, %c0_34], %46 {strides = array<i32>} : memref<4x8x8xbf16, #tpu.memory_space<vmem>>, vector<1x8x8xbf16>,
      %c3 = arith.constant 3 : index
      %c0_35 = arith.constant 0 : index
      %c0_36 = arith.constant 0 : index
      %47 = vector.load %arg5[%c3, %c0_35, %c0_36] : memref<4x32x8xbf16, #tpu.memory_space<vmem>>, vector<1x32x8xbf16>
      %48 = vector.shape_cast %47 : vector<1x32x8xbf16> to vector<32x8xbf16>
      %cst_37 = arith.constant dense<0.000000e+00> : vector<8x8xf32>
      %49 = tpu.matmul %13, %48, %cst_37 {dimension_numbers = #tpu.dot_dimension_numbers<[1], [0], [0], [1], [0, 0, 1, 1], [], []>} : vector<8x32xbf16>, vector<32x8xbf16>, vector<8x8xf32> -> vector<8x8xf32>
      %c3_38 = arith.constant 3 : index
      %c0_39 = arith.constant 0 : index
      %c0_40 = arith.constant 0 : index
      %50 = vector.load %arg6[%c3_38, %c0_39, %c0_40] : memref<4x1x8xf32, #tpu.memory_space<vmem>>, vector<1x1x8xf32>
      %51 = vector.shape_cast %50 : vector<1x1x8xf32> to vector<1x8xf32>
      %52 = vector.broadcast %51 : vector<1x8xf32> to vector<8x8xf32>
      %53 = arith.addf %49, %52 : vector<8x8xf32>
      %54 = arith.truncf %53 : vector<8x8xf32> to vector<8x8xbf16>
      %c3_41 = arith.constant 3 : index
      %c0_42 = arith.constant 0 : index
      %c0_43 = arith.constant 0 : index
      %55 = vector.load %arg14[%c3_41, %c0_42, %c0_43] : memref<4x8x8xbf16, #tpu.memory_space<vmem>>, vector<1x8x8xbf16>
      %56 = vector.shape_cast %55 : vector<1x8x8xbf16> to vector<8x8xbf16>
      %57 = vector.shape_cast %54 : vector<8x8xbf16> to vector<1x8x8xbf16>
      tpu.vector_store %arg14[%c3_41, %c0_42, %c0_43], %57 {strides = array<i32>} : memref<4x8x8xbf16, #tpu.memory_space<vmem>>, vector<1x8x8xbf16>,
      %cst_44 = arith.constant 0xFF800000 : f32
      %58 = vector.broadcast %cst_44 : f32 to vector<4x8x1xf32>
      %c0_45 = arith.constant 0 : index
      %c0_46 = arith.constant 0 : index
      %c0_47 = arith.constant 0 : index
      %59 = vector.load %arg15[%c0_45, %c0_46, %c0_47] : memref<4x8x1xf32, #tpu.memory_space<vmem>>, vector<4x8x1xf32>
      tpu.vector_store %arg15[%c0_45, %c0_46, %c0_47], %58 {strides = array<i32>} : memref<4x8x1xf32, #tpu.memory_space<vmem>>, vector<4x8x1xf32>,
      %cst_48 = arith.constant 0.000000e+00 : f32
      %60 = vector.broadcast %cst_48 : f32 to vector<4x8x1xf32>
      %c0_49 = arith.constant 0 : index
      %c0_50 = arith.constant 0 : index
      %c0_51 = arith.constant 0 : index
      %61 = vector.load %arg16[%c0_49, %c0_50, %c0_51] : memref<4x8x1xf32, #tpu.memory_space<vmem>>, vector<4x8x1xf32>
      tpu.vector_store %arg16[%c0_49, %c0_50, %c0_51], %60 {strides = array<i32>} : memref<4x8x1xf32, #tpu.memory_space<vmem>>, vector<4x8x1xf32>,
      %cst_52 = arith.constant 0.000000e+00 : f32
      %62 = vector.broadcast %cst_52 : f32 to vector<4x8x8xf32>
      %c0_53 = arith.constant 0 : index
      %c0_54 = arith.constant 0 : index
      %c0_55 = arith.constant 0 : index
      %63 = vector.load %arg17[%c0_53, %c0_54, %c0_55] : memref<4x8x8xf32, #tpu.memory_space<vmem>>, vector<4x8x8xf32>
      tpu.vector_store %arg17[%c0_53, %c0_54, %c0_55], %62 {strides = array<i32>} : memref<4x8x8xf32, #tpu.memory_space<vmem>>, vector<4x8x8xf32>,
    } else {
    }
    %c8_i32 = arith.constant 8 : i32
    %3 = arith.muli %arg2, %c8_i32 : i32
    %c8_i32_1 = arith.constant 8 : i32
    %4 = arith.muli %arg1, %c8_i32_1 : i32
    %c7_i32 = arith.constant 7 : i32
    %5 = arith.addi %4, %c7_i32 : i32
    %6 = arith.cmpi sle, %3, %5 : i32
    %7 = arith.extui %6 : i1 to i32
    %cst = arith.constant -1.000000e+30 : f32
    %c0_i32_2 = arith.constant 0 : i32
    %8 = arith.cmpi ne, %7, %c0_i32_2 : i32
    scf.if %8 {
      %c0 = arith.constant 0 : index
      %c0_5 = arith.constant 0 : index
      %c0_6 = arith.constant 0 : index
      %12 = vector.load %arg4[%c0, %c0_5, %c0_6] : memref<1x8x32xbf16, #tpu.memory_space<vmem>>, vector<1x8x32xbf16>
      %13 = vector.shape_cast %12 : vector<1x8x32xbf16> to vector<8x32xbf16>
      %c8_i32_7 = arith.constant 8 : i32
      %14 = arith.muli %arg1, %c8_i32_7 : i32
      %15 = tpu.iota {dimensions = array<i32: 0>} : vector<8x8xi32>
      %16 = vector.broadcast %14 : i32 to vector<8x8xi32>
      %17 = arith.addi %16, %15 : vector<8x8xi32>
      %c8_i32_8 = arith.constant 8 : i32
      %18 = arith.muli %arg2, %c8_i32_8 : i32
      %19 = tpu.iota {dimensions = array<i32: 1>} : vector<8x8xi32>
      %20 = vector.broadcast %18 : i32 to vector<8x8xi32>
      %21 = arith.addi %20, %19 : vector<8x8xi32>
      %22 = arith.cmpi sle, %21, %17 : vector<8x8xi32>
      %cst_9 = arith.constant 0.000000e+00 : f32
      %23 = vector.broadcast %cst_9 : f32 to vector<8x8xf32>
      %24 = vector.broadcast %cst : f32 to vector<8x8xf32>
      %25 = arith.select %22, %23, %24 : vector<8x8xi1>, vector<8x8xf32>
      %c0_10 = arith.constant 0 : index
      %c0_11 = arith.constant 0 : index
      %c0_12 = arith.constant 0 : index
      %26 = vector.load %arg7[%c0_10, %c0_11, %c0_12] : memref<2x32x8xbf16, #tpu.memory_space<vmem>>, vector<1x32x8xbf16>
      %27 = vector.shape_cast %26 : vector<1x32x8xbf16> to vector<32x8xbf16>
      %cst_13 = arith.constant dense<0.000000e+00> : vector<8x8xf32>
      %28 = tpu.matmul %13, %27, %cst_13 {dimension_numbers = #tpu.dot_dimension_numbers<[1], [0], [0], [1], [0, 0, 1, 1], [], []>} : vector<8x32xbf16>, vector<32x8xbf16>, vector<8x8xf32> -> vector<8x8xf32>
      %c0_14 = arith.constant 0 : index
      %c0_15 = arith.constant 0 : index
      %c0_16 = arith.constant 0 : index
      %29 = vector.load %arg8[%c0_14, %c0_15, %c0_16] : memref<2x1x8xf32, #tpu.memory_space<vmem>>, vector<1x1x8xf32>
      %30 = vector.shape_cast %29 : vector<1x1x8xf32> to vector<1x8xf32>
      %31 = vector.broadcast %30 : vector<1x8xf32> to vector<8x8xf32>
      %32 = arith.addf %28, %31 : vector<8x8xf32>
      %33 = arith.truncf %32 : vector<8x8xf32> to vector<8x8xbf16>
      %c0_17 = arith.constant 0 : index
      %c0_18 = arith.constant 0 : index
      %c0_19 = arith.constant 0 : index
      %34 = vector.load %arg9[%c0_17, %c0_18, %c0_19] : memref<2x32x8xbf16, #tpu.memory_space<vmem>>, vector<1x32x8xbf16>
      %35 = vector.shape_cast %34 : vector<1x32x8xbf16> to vector<32x8xbf16>
      %cst_20 = arith.constant dense<0.000000e+00> : vector<8x8xf32>
      %36 = tpu.matmul %13, %35, %cst_20 {dimension_numbers = #tpu.dot_dimension_numbers<[1], [0], [0], [1], [0, 0, 1, 1], [], []>} : vector<8x32xbf16>, vector<32x8xbf16>, vector<8x8xf32> -> vector<8x8xf32>
      %c0_21 = arith.constant 0 : index
      %c0_22 = arith.constant 0 : index
      %c0_23 = arith.constant 0 : index
      %37 = vector.load %arg10[%c0_21, %c0_22, %c0_23] : memref<2x1x8xf32, #tpu.memory_space<vmem>>, vector<1x1x8xf32>
      %38 = vector.shape_cast %37 : vector<1x1x8xf32> to vector<1x8xf32>
      %39 = vector.broadcast %38 : vector<1x8xf32> to vector<8x8xf32>
      %40 = arith.addf %36, %39 : vector<8x8xf32>
      %41 = arith.truncf %40 : vector<8x8xf32> to vector<8x8xbf16>
      %c0_24 = arith.constant 0 : index
      %c0_25 = arith.constant 0 : index
      %c0_26 = arith.constant 0 : index
      %42 = vector.load %arg14[%c0_24, %c0_25, %c0_26] : memref<4x8x8xbf16, #tpu.memory_space<vmem>>, vector<1x8x8xbf16>
      %43 = vector.shape_cast %42 : vector<1x8x8xbf16> to vector<8x8xbf16>
      %44 = tpu.transpose %33, [1, 0] : vector<8x8xbf16> -> vector<8x8xbf16>
      %cst_27 = arith.constant dense<0.000000e+00> : vector<8x8xf32>
      %45 = tpu.matmul %43, %44, %cst_27 {dimension_numbers = #tpu.dot_dimension_numbers<[1], [0], [0], [1], [0, 0, 1, 1], [], []>} : vector<8x8xbf16>, vector<8x8xbf16>, vector<8x8xf32> -> vector<8x8xf32>
      %46 = arith.addf %45, %25 : vector<8x8xf32>
      %c0_28 = arith.constant 0 : index
      %c0_29 = arith.constant 0 : index
      %c0_30 = arith.constant 0 : index
      %47 = vector.load %arg15[%c0_28, %c0_29, %c0_30] : memref<4x8x1xf32, #tpu.memory_space<vmem>>, vector<1x8x1xf32>
      %48 = vector.shape_cast %47 : vector<1x8x1xf32> to vector<8x1xf32>
      %cst_31 = arith.constant dense<0xFF800000> : vector<8xf32>
      %49 = vector.multi_reduction <maximumf>, %46, %cst_31 [1] : vector<8x8xf32> to vector<8xf32>
      %50 = vector.shape_cast %49 : vector<8xf32> to vector<8x1xf32>
      %51 = arith.maximumf %48, %50 : vector<8x1xf32>
      %52 = arith.subf %48, %51 : vector<8x1xf32>
      %53 = math.exp %52 : vector<8x1xf32>
      %54 = vector.broadcast %51 : vector<8x1xf32> to vector<8x8xf32>
      %55 = arith.subf %46, %54 : vector<8x8xf32>
      %56 = math.exp %55 : vector<8x8xf32>
      %c0_32 = arith.constant 0 : index
      %c0_33 = arith.constant 0 : index
      %c0_34 = arith.constant 0 : index
      %57 = vector.load %arg16[%c0_32, %c0_33, %c0_34] : memref<4x8x1xf32, #tpu.memory_space<vmem>>, vector<1x8x1xf32>
      %58 = vector.shape_cast %57 : vector<1x8x1xf32> to vector<8x1xf32>
      %59 = arith.mulf %53, %58 : vector<8x1xf32>
      %cst_35 = arith.constant dense<0.000000e+00> : vector<8xf32>
      %60 = vector.multi_reduction <add>, %56, %cst_35 [1] : vector<8x8xf32> to vector<8xf32>
      %61 = vector.shape_cast %60 : vector<8xf32> to vector<8x1xf32>
      %62 = arith.addf %59, %61 : vector<8x1xf32>
      %c0_36 = arith.constant 0 : index
      %c0_37 = arith.constant 0 : index
      %c0_38 = arith.constant 0 : index
      %63 = vector.load %arg16[%c0_36, %c0_37, %c0_38] : memref<4x8x1xf32, #tpu.memory_space<vmem>>, vector<1x8x1xf32>
      %64 = vector.shape_cast %63 : vector<1x8x1xf32> to vector<8x1xf32>
      %65 = vector.shape_cast %62 : vector<8x1xf32> to vector<1x8x1xf32>
      tpu.vector_store %arg16[%c0_36, %c0_37, %c0_38], %65 {strides = array<i32>} : memref<4x8x1xf32, #tpu.memory_space<vmem>>, vector<1x8x1xf32>,
      %c0_39 = arith.constant 0 : index
      %c0_40 = arith.constant 0 : index
      %c0_41 = arith.constant 0 : index
      %66 = vector.load %arg17[%c0_39, %c0_40, %c0_41] : memref<4x8x8xf32, #tpu.memory_space<vmem>>, vector<1x8x8xf32>
      %67 = vector.shape_cast %66 : vector<1x8x8xf32> to vector<8x8xf32>
      %68 = vector.broadcast %53 : vector<8x1xf32> to vector<8x8xf32>
      %69 = arith.mulf %68, %67 : vector<8x8xf32>
      %70 = arith.truncf %56 : vector<8x8xf32> to vector<8x8xbf16>
      %cst_42 = arith.constant dense<0.000000e+00> : vector<8x8xf32>
      %71 = tpu.matmul %70, %41, %cst_42 {dimension_numbers = #tpu.dot_dimension_numbers<[1], [0], [0], [1], [0, 0, 1, 1], [], []>} : vector<8x8xbf16>, vector<8x8xbf16>, vector<8x8xf32> -> vector<8x8xf32>
      %72 = arith.addf %69, %71 : vector<8x8xf32>
      %c0_43 = arith.constant 0 : index
      %c0_44 = arith.constant 0 : index
      %c0_45 = arith.constant 0 : index
      %73 = vector.load %arg17[%c0_43, %c0_44, %c0_45] : memref<4x8x8xf32, #tpu.memory_space<vmem>>, vector<1x8x8xf32>
      %74 = vector.shape_cast %73 : vector<1x8x8xf32> to vector<8x8xf32>
      %75 = vector.shape_cast %72 : vector<8x8xf32> to vector<1x8x8xf32>
      tpu.vector_store %arg17[%c0_43, %c0_44, %c0_45], %75 {strides = array<i32>} : memref<4x8x8xf32, #tpu.memory_space<vmem>>, vector<1x8x8xf32>,
      %c0_46 = arith.constant 0 : index
      %c0_47 = arith.constant 0 : index
      %c0_48 = arith.constant 0 : index
      %76 = vector.load %arg15[%c0_46, %c0_47, %c0_48] : memref<4x8x1xf32, #tpu.memory_space<vmem>>, vector<1x8x1xf32>
      %77 = vector.shape_cast %76 : vector<1x8x1xf32> to vector<8x1xf32>
      %78 = vector.shape_cast %51 : vector<8x1xf32> to vector<1x8x1xf32>
      tpu.vector_store %arg15[%c0_46, %c0_47, %c0_48], %78 {strides = array<i32>} : memref<4x8x1xf32, #tpu.memory_space<vmem>>, vector<1x8x1xf32>,
      %c1 = arith.constant 1 : index
      %c0_49 = arith.constant 0 : index
      %c0_50 = arith.constant 0 : index
      %79 = vector.load %arg14[%c1, %c0_49, %c0_50] : memref<4x8x8xbf16, #tpu.memory_space<vmem>>, vector<1x8x8xbf16>
      %80 = vector.shape_cast %79 : vector<1x8x8xbf16> to vector<8x8xbf16>
      %81 = tpu.transpose %33, [1, 0] : vector<8x8xbf16> -> vector<8x8xbf16>
      %cst_51 = arith.constant dense<0.000000e+00> : vector<8x8xf32>
      %82 = tpu.matmul %80, %81, %cst_51 {dimension_numbers = #tpu.dot_dimension_numbers<[1], [0], [0], [1], [0, 0, 1, 1], [], []>} : vector<8x8xbf16>, vector<8x8xbf16>, vector<8x8xf32> -> vector<8x8xf32>
      %83 = arith.addf %82, %25 : vector<8x8xf32>
      %c1_52 = arith.constant 1 : index
      %c0_53 = arith.constant 0 : index
      %c0_54 = arith.constant 0 : index
      %84 = vector.load %arg15[%c1_52, %c0_53, %c0_54] : memref<4x8x1xf32, #tpu.memory_space<vmem>>, vector<1x8x1xf32>
      %85 = vector.shape_cast %84 : vector<1x8x1xf32> to vector<8x1xf32>
      %cst_55 = arith.constant dense<0xFF800000> : vector<8xf32>
      %86 = vector.multi_reduction <maximumf>, %83, %cst_55 [1] : vector<8x8xf32> to vector<8xf32>
      %87 = vector.shape_cast %86 : vector<8xf32> to vector<8x1xf32>
      %88 = arith.maximumf %85, %87 : vector<8x1xf32>
      %89 = arith.subf %85, %88 : vector<8x1xf32>
      %90 = math.exp %89 : vector<8x1xf32>
      %91 = vector.broadcast %88 : vector<8x1xf32> to vector<8x8xf32>
      %92 = arith.subf %83, %91 : vector<8x8xf32>
      %93 = math.exp %92 : vector<8x8xf32>
      %c1_56 = arith.constant 1 : index
      %c0_57 = arith.constant 0 : index
      %c0_58 = arith.constant 0 : index
      %94 = vector.load %arg16[%c1_56, %c0_57, %c0_58] : memref<4x8x1xf32, #tpu.memory_space<vmem>>, vector<1x8x1xf32>
      %95 = vector.shape_cast %94 : vector<1x8x1xf32> to vector<8x1xf32>
      %96 = arith.mulf %90, %95 : vector<8x1xf32>
      %cst_59 = arith.constant dense<0.000000e+00> : vector<8xf32>
      %97 = vector.multi_reduction <add>, %93, %cst_59 [1] : vector<8x8xf32> to vector<8xf32>
      %98 = vector.shape_cast %97 : vector<8xf32> to vector<8x1xf32>
      %99 = arith.addf %96, %98 : vector<8x1xf32>
      %c1_60 = arith.constant 1 : index
      %c0_61 = arith.constant 0 : index
      %c0_62 = arith.constant 0 : index
      %100 = vector.load %arg16[%c1_60, %c0_61, %c0_62] : memref<4x8x1xf32, #tpu.memory_space<vmem>>, vector<1x8x1xf32>
      %101 = vector.shape_cast %100 : vector<1x8x1xf32> to vector<8x1xf32>
      %102 = vector.shape_cast %99 : vector<8x1xf32> to vector<1x8x1xf32>
      tpu.vector_store %arg16[%c1_60, %c0_61, %c0_62], %102 {strides = array<i32>} : memref<4x8x1xf32, #tpu.memory_space<vmem>>, vector<1x8x1xf32>,
      %c1_63 = arith.constant 1 : index
      %c0_64 = arith.constant 0 : index
      %c0_65 = arith.constant 0 : index
      %103 = vector.load %arg17[%c1_63, %c0_64, %c0_65] : memref<4x8x8xf32, #tpu.memory_space<vmem>>, vector<1x8x8xf32>
      %104 = vector.shape_cast %103 : vector<1x8x8xf32> to vector<8x8xf32>
      %105 = vector.broadcast %90 : vector<8x1xf32> to vector<8x8xf32>
      %106 = arith.mulf %105, %104 : vector<8x8xf32>
      %107 = arith.truncf %93 : vector<8x8xf32> to vector<8x8xbf16>
      %cst_66 = arith.constant dense<0.000000e+00> : vector<8x8xf32>
      %108 = tpu.matmul %107, %41, %cst_66 {dimension_numbers = #tpu.dot_dimension_numbers<[1], [0], [0], [1], [0, 0, 1, 1], [], []>} : vector<8x8xbf16>, vector<8x8xbf16>, vector<8x8xf32> -> vector<8x8xf32>
      %109 = arith.addf %106, %108 : vector<8x8xf32>
      %c1_67 = arith.constant 1 : index
      %c0_68 = arith.constant 0 : index
      %c0_69 = arith.constant 0 : index
      %110 = vector.load %arg17[%c1_67, %c0_68, %c0_69] : memref<4x8x8xf32, #tpu.memory_space<vmem>>, vector<1x8x8xf32>
      %111 = vector.shape_cast %110 : vector<1x8x8xf32> to vector<8x8xf32>
      %112 = vector.shape_cast %109 : vector<8x8xf32> to vector<1x8x8xf32>
      tpu.vector_store %arg17[%c1_67, %c0_68, %c0_69], %112 {strides = array<i32>} : memref<4x8x8xf32, #tpu.memory_space<vmem>>, vector<1x8x8xf32>,
      %c1_70 = arith.constant 1 : index
      %c0_71 = arith.constant 0 : index
      %c0_72 = arith.constant 0 : index
      %113 = vector.load %arg15[%c1_70, %c0_71, %c0_72] : memref<4x8x1xf32, #tpu.memory_space<vmem>>, vector<1x8x1xf32>
      %114 = vector.shape_cast %113 : vector<1x8x1xf32> to vector<8x1xf32>
      %115 = vector.shape_cast %88 : vector<8x1xf32> to vector<1x8x1xf32>
      tpu.vector_store %arg15[%c1_70, %c0_71, %c0_72], %115 {strides = array<i32>} : memref<4x8x1xf32, #tpu.memory_space<vmem>>, vector<1x8x1xf32>,
      %c1_73 = arith.constant 1 : index
      %c0_74 = arith.constant 0 : index
      %c0_75 = arith.constant 0 : index
      %116 = vector.load %arg7[%c1_73, %c0_74, %c0_75] : memref<2x32x8xbf16, #tpu.memory_space<vmem>>, vector<1x32x8xbf16>
      %117 = vector.shape_cast %116 : vector<1x32x8xbf16> to vector<32x8xbf16>
      %cst_76 = arith.constant dense<0.000000e+00> : vector<8x8xf32>
      %118 = tpu.matmul %13, %117, %cst_76 {dimension_numbers = #tpu.dot_dimension_numbers<[1], [0], [0], [1], [0, 0, 1, 1], [], []>} : vector<8x32xbf16>, vector<32x8xbf16>, vector<8x8xf32> -> vector<8x8xf32>
      %c1_77 = arith.constant 1 : index
      %c0_78 = arith.constant 0 : index
      %c0_79 = arith.constant 0 : index
      %119 = vector.load %arg8[%c1_77, %c0_78, %c0_79] : memref<2x1x8xf32, #tpu.memory_space<vmem>>, vector<1x1x8xf32>
      %120 = vector.shape_cast %119 : vector<1x1x8xf32> to vector<1x8xf32>
      %121 = vector.broadcast %120 : vector<1x8xf32> to vector<8x8xf32>
      %122 = arith.addf %118, %121 : vector<8x8xf32>
      %123 = arith.truncf %122 : vector<8x8xf32> to vector<8x8xbf16>
      %c1_80 = arith.constant 1 : index
      %c0_81 = arith.constant 0 : index
      %c0_82 = arith.constant 0 : index
      %124 = vector.load %arg9[%c1_80, %c0_81, %c0_82] : memref<2x32x8xbf16, #tpu.memory_space<vmem>>, vector<1x32x8xbf16>
      %125 = vector.shape_cast %124 : vector<1x32x8xbf16> to vector<32x8xbf16>
      %cst_83 = arith.constant dense<0.000000e+00> : vector<8x8xf32>
      %126 = tpu.matmul %13, %125, %cst_83 {dimension_numbers = #tpu.dot_dimension_numbers<[1], [0], [0], [1], [0, 0, 1, 1], [], []>} : vector<8x32xbf16>, vector<32x8xbf16>, vector<8x8xf32> -> vector<8x8xf32>
      %c1_84 = arith.constant 1 : index
      %c0_85 = arith.constant 0 : index
      %c0_86 = arith.constant 0 : index
      %127 = vector.load %arg10[%c1_84, %c0_85, %c0_86] : memref<2x1x8xf32, #tpu.memory_space<vmem>>, vector<1x1x8xf32>
      %128 = vector.shape_cast %127 : vector<1x1x8xf32> to vector<1x8xf32>
      %129 = vector.broadcast %128 : vector<1x8xf32> to vector<8x8xf32>
      %130 = arith.addf %126, %129 : vector<8x8xf32>
      %131 = arith.truncf %130 : vector<8x8xf32> to vector<8x8xbf16>
      %c2 = arith.constant 2 : index
      %c0_87 = arith.constant 0 : index
      %c0_88 = arith.constant 0 : index
      %132 = vector.load %arg14[%c2, %c0_87, %c0_88] : memref<4x8x8xbf16, #tpu.memory_space<vmem>>, vector<1x8x8xbf16>
      %133 = vector.shape_cast %132 : vector<1x8x8xbf16> to vector<8x8xbf16>
      %134 = tpu.transpose %123, [1, 0] : vector<8x8xbf16> -> vector<8x8xbf16>
      %cst_89 = arith.constant dense<0.000000e+00> : vector<8x8xf32>
      %135 = tpu.matmul %133, %134, %cst_89 {dimension_numbers = #tpu.dot_dimension_numbers<[1], [0], [0], [1], [0, 0, 1, 1], [], []>} : vector<8x8xbf16>, vector<8x8xbf16>, vector<8x8xf32> -> vector<8x8xf32>
      %136 = arith.addf %135, %25 : vector<8x8xf32>
      %c2_90 = arith.constant 2 : index
      %c0_91 = arith.constant 0 : index
      %c0_92 = arith.constant 0 : index
      %137 = vector.load %arg15[%c2_90, %c0_91, %c0_92] : memref<4x8x1xf32, #tpu.memory_space<vmem>>, vector<1x8x1xf32>
      %138 = vector.shape_cast %137 : vector<1x8x1xf32> to vector<8x1xf32>
      %cst_93 = arith.constant dense<0xFF800000> : vector<8xf32>
      %139 = vector.multi_reduction <maximumf>, %136, %cst_93 [1] : vector<8x8xf32> to vector<8xf32>
      %140 = vector.shape_cast %139 : vector<8xf32> to vector<8x1xf32>
      %141 = arith.maximumf %138, %140 : vector<8x1xf32>
      %142 = arith.subf %138, %141 : vector<8x1xf32>
      %143 = math.exp %142 : vector<8x1xf32>
      %144 = vector.broadcast %141 : vector<8x1xf32> to vector<8x8xf32>
      %145 = arith.subf %136, %144 : vector<8x8xf32>
      %146 = math.exp %145 : vector<8x8xf32>
      %c2_94 = arith.constant 2 : index
      %c0_95 = arith.constant 0 : index
      %c0_96 = arith.constant 0 : index
      %147 = vector.load %arg16[%c2_94, %c0_95, %c0_96] : memref<4x8x1xf32, #tpu.memory_space<vmem>>, vector<1x8x1xf32>
      %148 = vector.shape_cast %147 : vector<1x8x1xf32> to vector<8x1xf32>
      %149 = arith.mulf %143, %148 : vector<8x1xf32>
      %cst_97 = arith.constant dense<0.000000e+00> : vector<8xf32>
      %150 = vector.multi_reduction <add>, %146, %cst_97 [1] : vector<8x8xf32> to vector<8xf32>
      %151 = vector.shape_cast %150 : vector<8xf32> to vector<8x1xf32>
      %152 = arith.addf %149, %151 : vector<8x1xf32>
      %c2_98 = arith.constant 2 : index
      %c0_99 = arith.constant 0 : index
      %c0_100 = arith.constant 0 : index
      %153 = vector.load %arg16[%c2_98, %c0_99, %c0_100] : memref<4x8x1xf32, #tpu.memory_space<vmem>>, vector<1x8x1xf32>
      %154 = vector.shape_cast %153 : vector<1x8x1xf32> to vector<8x1xf32>
      %155 = vector.shape_cast %152 : vector<8x1xf32> to vector<1x8x1xf32>
      tpu.vector_store %arg16[%c2_98, %c0_99, %c0_100], %155 {strides = array<i32>} : memref<4x8x1xf32, #tpu.memory_space<vmem>>, vector<1x8x1xf32>,
      %c2_101 = arith.constant 2 : index
      %c0_102 = arith.constant 0 : index
      %c0_103 = arith.constant 0 : index
      %156 = vector.load %arg17[%c2_101, %c0_102, %c0_103] : memref<4x8x8xf32, #tpu.memory_space<vmem>>, vector<1x8x8xf32>
      %157 = vector.shape_cast %156 : vector<1x8x8xf32> to vector<8x8xf32>
      %158 = vector.broadcast %143 : vector<8x1xf32> to vector<8x8xf32>
      %159 = arith.mulf %158, %157 : vector<8x8xf32>
      %160 = arith.truncf %146 : vector<8x8xf32> to vector<8x8xbf16>
      %cst_104 = arith.constant dense<0.000000e+00> : vector<8x8xf32>
      %161 = tpu.matmul %160, %131, %cst_104 {dimension_numbers = #tpu.dot_dimension_numbers<[1], [0], [0], [1], [0, 0, 1, 1], [], []>} : vector<8x8xbf16>, vector<8x8xbf16>, vector<8x8xf32> -> vector<8x8xf32>
      %162 = arith.addf %159, %161 : vector<8x8xf32>
      %c2_105 = arith.constant 2 : index
      %c0_106 = arith.constant 0 : index
      %c0_107 = arith.constant 0 : index
      %163 = vector.load %arg17[%c2_105, %c0_106, %c0_107] : memref<4x8x8xf32, #tpu.memory_space<vmem>>, vector<1x8x8xf32>
      %164 = vector.shape_cast %163 : vector<1x8x8xf32> to vector<8x8xf32>
      %165 = vector.shape_cast %162 : vector<8x8xf32> to vector<1x8x8xf32>
      tpu.vector_store %arg17[%c2_105, %c0_106, %c0_107], %165 {strides = array<i32>} : memref<4x8x8xf32, #tpu.memory_space<vmem>>, vector<1x8x8xf32>,
      %c2_108 = arith.constant 2 : index
      %c0_109 = arith.constant 0 : index
      %c0_110 = arith.constant 0 : index
      %166 = vector.load %arg15[%c2_108, %c0_109, %c0_110] : memref<4x8x1xf32, #tpu.memory_space<vmem>>, vector<1x8x1xf32>
      %167 = vector.shape_cast %166 : vector<1x8x1xf32> to vector<8x1xf32>
      %168 = vector.shape_cast %141 : vector<8x1xf32> to vector<1x8x1xf32>
      tpu.vector_store %arg15[%c2_108, %c0_109, %c0_110], %168 {strides = array<i32>} : memref<4x8x1xf32, #tpu.memory_space<vmem>>, vector<1x8x1xf32>,
      %c3 = arith.constant 3 : index
      %c0_111 = arith.constant 0 : index
      %c0_112 = arith.constant 0 : index
      %169 = vector.load %arg14[%c3, %c0_111, %c0_112] : memref<4x8x8xbf16, #tpu.memory_space<vmem>>, vector<1x8x8xbf16>
      %170 = vector.shape_cast %169 : vector<1x8x8xbf16> to vector<8x8xbf16>
      %171 = tpu.transpose %123, [1, 0] : vector<8x8xbf16> -> vector<8x8xbf16>
      %cst_113 = arith.constant dense<0.000000e+00> : vector<8x8xf32>
      %172 = tpu.matmul %170, %171, %cst_113 {dimension_numbers = #tpu.dot_dimension_numbers<[1], [0], [0], [1], [0, 0, 1, 1], [], []>} : vector<8x8xbf16>, vector<8x8xbf16>, vector<8x8xf32> -> vector<8x8xf32>
      %173 = arith.addf %172, %25 : vector<8x8xf32>
      %c3_114 = arith.constant 3 : index
      %c0_115 = arith.constant 0 : index
      %c0_116 = arith.constant 0 : index
      %174 = vector.load %arg15[%c3_114, %c0_115, %c0_116] : memref<4x8x1xf32, #tpu.memory_space<vmem>>, vector<1x8x1xf32>
      %175 = vector.shape_cast %174 : vector<1x8x1xf32> to vector<8x1xf32>
      %cst_117 = arith.constant dense<0xFF800000> : vector<8xf32>
      %176 = vector.multi_reduction <maximumf>, %173, %cst_117 [1] : vector<8x8xf32> to vector<8xf32>
      %177 = vector.shape_cast %176 : vector<8xf32> to vector<8x1xf32>
      %178 = arith.maximumf %175, %177 : vector<8x1xf32>
      %179 = arith.subf %175, %178 : vector<8x1xf32>
      %180 = math.exp %179 : vector<8x1xf32>
      %181 = vector.broadcast %178 : vector<8x1xf32> to vector<8x8xf32>
      %182 = arith.subf %173, %181 : vector<8x8xf32>
      %183 = math.exp %182 : vector<8x8xf32>
      %c3_118 = arith.constant 3 : index
      %c0_119 = arith.constant 0 : index
      %c0_120 = arith.constant 0 : index
      %184 = vector.load %arg16[%c3_118, %c0_119, %c0_120] : memref<4x8x1xf32, #tpu.memory_space<vmem>>, vector<1x8x1xf32>
      %185 = vector.shape_cast %184 : vector<1x8x1xf32> to vector<8x1xf32>
      %186 = arith.mulf %180, %185 : vector<8x1xf32>
      %cst_121 = arith.constant dense<0.000000e+00> : vector<8xf32>
      %187 = vector.multi_reduction <add>, %183, %cst_121 [1] : vector<8x8xf32> to vector<8xf32>
      %188 = vector.shape_cast %187 : vector<8xf32> to vector<8x1xf32>
      %189 = arith.addf %186, %188 : vector<8x1xf32>
      %c3_122 = arith.constant 3 : index
      %c0_123 = arith.constant 0 : index
      %c0_124 = arith.constant 0 : index
      %190 = vector.load %arg16[%c3_122, %c0_123, %c0_124] : memref<4x8x1xf32, #tpu.memory_space<vmem>>, vector<1x8x1xf32>
      %191 = vector.shape_cast %190 : vector<1x8x1xf32> to vector<8x1xf32>
      %192 = vector.shape_cast %189 : vector<8x1xf32> to vector<1x8x1xf32>
      tpu.vector_store %arg16[%c3_122, %c0_123, %c0_124], %192 {strides = array<i32>} : memref<4x8x1xf32, #tpu.memory_space<vmem>>, vector<1x8x1xf32>,
      %c3_125 = arith.constant 3 : index
      %c0_126 = arith.constant 0 : index
      %c0_127 = arith.constant 0 : index
      %193 = vector.load %arg17[%c3_125, %c0_126, %c0_127] : memref<4x8x8xf32, #tpu.memory_space<vmem>>, vector<1x8x8xf32>
      %194 = vector.shape_cast %193 : vector<1x8x8xf32> to vector<8x8xf32>
      %195 = vector.broadcast %180 : vector<8x1xf32> to vector<8x8xf32>
      %196 = arith.mulf %195, %194 : vector<8x8xf32>
      %197 = arith.truncf %183 : vector<8x8xf32> to vector<8x8xbf16>
      %cst_128 = arith.constant dense<0.000000e+00> : vector<8x8xf32>
      %198 = tpu.matmul %197, %131, %cst_128 {dimension_numbers = #tpu.dot_dimension_numbers<[1], [0], [0], [1], [0, 0, 1, 1], [], []>} : vector<8x8xbf16>, vector<8x8xbf16>, vector<8x8xf32> -> vector<8x8xf32>
      %199 = arith.addf %196, %198 : vector<8x8xf32>
      %c3_129 = arith.constant 3 : index
      %c0_130 = arith.constant 0 : index
      %c0_131 = arith.constant 0 : index
      %200 = vector.load %arg17[%c3_129, %c0_130, %c0_131] : memref<4x8x8xf32, #tpu.memory_space<vmem>>, vector<1x8x8xf32>
      %201 = vector.shape_cast %200 : vector<1x8x8xf32> to vector<8x8xf32>
      %202 = vector.shape_cast %199 : vector<8x8xf32> to vector<1x8x8xf32>
      tpu.vector_store %arg17[%c3_129, %c0_130, %c0_131], %202 {strides = array<i32>} : memref<4x8x8xf32, #tpu.memory_space<vmem>>, vector<1x8x8xf32>,
      %c3_132 = arith.constant 3 : index
      %c0_133 = arith.constant 0 : index
      %c0_134 = arith.constant 0 : index
      %203 = vector.load %arg15[%c3_132, %c0_133, %c0_134] : memref<4x8x1xf32, #tpu.memory_space<vmem>>, vector<1x8x1xf32>
      %204 = vector.shape_cast %203 : vector<1x8x1xf32> to vector<8x1xf32>
      %205 = vector.shape_cast %178 : vector<8x1xf32> to vector<1x8x1xf32>
      tpu.vector_store %arg15[%c3_132, %c0_133, %c0_134], %205 {strides = array<i32>} : memref<4x8x1xf32, #tpu.memory_space<vmem>>, vector<1x8x1xf32>,
    } else {
    }
    %c0_i32_3 = arith.constant 0 : i32
    %9 = arith.cmpi eq, %arg2, %c0_i32_3 : i32
    %10 = arith.extui %9 : i1 to i32
    %c0_i32_4 = arith.constant 0 : i32
    %11 = arith.cmpi ne, %10, %c0_i32_4 : i32
    scf.if %11 {
      %cst_5 = arith.constant 0.000000e+00 : f32
      %12 = vector.broadcast %cst_5 : f32 to vector<8x32xf32>
      %c0 = arith.constant 0 : index
      %c0_6 = arith.constant 0 : index
      %c0_7 = arith.constant 0 : index
      %13 = vector.load %arg17[%c0, %c0_6, %c0_7] : memref<4x8x8xf32, #tpu.memory_space<vmem>>, vector<1x8x8xf32>
      %14 = vector.shape_cast %13 : vector<1x8x8xf32> to vector<8x8xf32>
      %c0_8 = arith.constant 0 : index
      %c0_9 = arith.constant 0 : index
      %c0_10 = arith.constant 0 : index
      %15 = vector.load %arg16[%c0_8, %c0_9, %c0_10] : memref<4x8x1xf32, #tpu.memory_space<vmem>>, vector<1x8x1xf32>
      %16 = vector.shape_cast %15 : vector<1x8x1xf32> to vector<8x1xf32>
      %17 = tpu.reciprocal %16 {approx = true} : vector<8x1xf32> -> vector<8x1xf32>
      %18 = vector.broadcast %17 : vector<8x1xf32> to vector<8x8xf32>
      %19 = arith.mulf %14, %18 : vector<8x8xf32>
      %20 = arith.truncf %19 : vector<8x8xf32> to vector<8x8xbf16>
      %c0_11 = arith.constant 0 : index
      %c0_12 = arith.constant 0 : index
      %c0_13 = arith.constant 0 : index
      %21 = vector.load %arg11[%c0_11, %c0_12, %c0_13] : memref<4x8x32xbf16, #tpu.memory_space<vmem>>, vector<1x8x32xbf16>
      %22 = vector.shape_cast %21 : vector<1x8x32xbf16> to vector<8x32xbf16>
      %cst_14 = arith.constant dense<0.000000e+00> : vector<8x32xf32>
      %23 = tpu.matmul %20, %22, %cst_14 {dimension_numbers = #tpu.dot_dimension_numbers<[1], [0], [0], [1], [0, 0, 1, 1], [], []>} : vector<8x8xbf16>, vector<8x32xbf16>, vector<8x32xf32> -> vector<8x32xf32>
      %24 = arith.addf %12, %23 : vector<8x32xf32>
      %c1 = arith.constant 1 : index
      %c0_15 = arith.constant 0 : index
      %c0_16 = arith.constant 0 : index
      %25 = vector.load %arg17[%c1, %c0_15, %c0_16] : memref<4x8x8xf32, #tpu.memory_space<vmem>>, vector<1x8x8xf32>
      %26 = vector.shape_cast %25 : vector<1x8x8xf32> to vector<8x8xf32>
      %c1_17 = arith.constant 1 : index
      %c0_18 = arith.constant 0 : index
      %c0_19 = arith.constant 0 : index
      %27 = vector.load %arg16[%c1_17, %c0_18, %c0_19] : memref<4x8x1xf32, #tpu.memory_space<vmem>>, vector<1x8x1xf32>
      %28 = vector.shape_cast %27 : vector<1x8x1xf32> to vector<8x1xf32>
      %29 = tpu.reciprocal %28 {approx = true} : vector<8x1xf32> -> vector<8x1xf32>
      %30 = vector.broadcast %29 : vector<8x1xf32> to vector<8x8xf32>
      %31 = arith.mulf %26, %30 : vector<8x8xf32>
      %32 = arith.truncf %31 : vector<8x8xf32> to vector<8x8xbf16>
      %c1_20 = arith.constant 1 : index
      %c0_21 = arith.constant 0 : index
      %c0_22 = arith.constant 0 : index
      %33 = vector.load %arg11[%c1_20, %c0_21, %c0_22] : memref<4x8x32xbf16, #tpu.memory_space<vmem>>, vector<1x8x32xbf16>
      %34 = vector.shape_cast %33 : vector<1x8x32xbf16> to vector<8x32xbf16>
      %cst_23 = arith.constant dense<0.000000e+00> : vector<8x32xf32>
      %35 = tpu.matmul %32, %34, %cst_23 {dimension_numbers = #tpu.dot_dimension_numbers<[1], [0], [0], [1], [0, 0, 1, 1], [], []>} : vector<8x8xbf16>, vector<8x32xbf16>, vector<8x32xf32> -> vector<8x32xf32>
      %36 = arith.addf %24, %35 : vector<8x32xf32>
      %c2 = arith.constant 2 : index
      %c0_24 = arith.constant 0 : index
      %c0_25 = arith.constant 0 : index
      %37 = vector.load %arg17[%c2, %c0_24, %c0_25] : memref<4x8x8xf32, #tpu.memory_space<vmem>>, vector<1x8x8xf32>
      %38 = vector.shape_cast %37 : vector<1x8x8xf32> to vector<8x8xf32>
      %c2_26 = arith.constant 2 : index
      %c0_27 = arith.constant 0 : index
      %c0_28 = arith.constant 0 : index
      %39 = vector.load %arg16[%c2_26, %c0_27, %c0_28] : memref<4x8x1xf32, #tpu.memory_space<vmem>>, vector<1x8x1xf32>
      %40 = vector.shape_cast %39 : vector<1x8x1xf32> to vector<8x1xf32>
      %41 = tpu.reciprocal %40 {approx = true} : vector<8x1xf32> -> vector<8x1xf32>
      %42 = vector.broadcast %41 : vector<8x1xf32> to vector<8x8xf32>
      %43 = arith.mulf %38, %42 : vector<8x8xf32>
      %44 = arith.truncf %43 : vector<8x8xf32> to vector<8x8xbf16>
      %c2_29 = arith.constant 2 : index
      %c0_30 = arith.constant 0 : index
      %c0_31 = arith.constant 0 : index
      %45 = vector.load %arg11[%c2_29, %c0_30, %c0_31] : memref<4x8x32xbf16, #tpu.memory_space<vmem>>, vector<1x8x32xbf16>
      %46 = vector.shape_cast %45 : vector<1x8x32xbf16> to vector<8x32xbf16>
      %cst_32 = arith.constant dense<0.000000e+00> : vector<8x32xf32>
      %47 = tpu.matmul %44, %46, %cst_32 {dimension_numbers = #tpu.dot_dimension_numbers<[1], [0], [0], [1], [0, 0, 1, 1], [], []>} : vector<8x8xbf16>, vector<8x32xbf16>, vector<8x32xf32> -> vector<8x32xf32>
      %48 = arith.addf %36, %47 : vector<8x32xf32>
      %c3 = arith.constant 3 : index
      %c0_33 = arith.constant 0 : index
      %c0_34 = arith.constant 0 : index
      %49 = vector.load %arg17[%c3, %c0_33, %c0_34] : memref<4x8x8xf32, #tpu.memory_space<vmem>>, vector<1x8x8xf32>
      %50 = vector.shape_cast %49 : vector<1x8x8xf32> to vector<8x8xf32>
      %c3_35 = arith.constant 3 : index
      %c0_36 = arith.constant 0 : index
      %c0_37 = arith.constant 0 : index
      %51 = vector.load %arg16[%c3_35, %c0_36, %c0_37] : memref<4x8x1xf32, #tpu.memory_space<vmem>>, vector<1x8x1xf32>
      %52 = vector.shape_cast %51 : vector<1x8x1xf32> to vector<8x1xf32>
      %53 = tpu.reciprocal %52 {approx = true} : vector<8x1xf32> -> vector<8x1xf32>
      %54 = vector.broadcast %53 : vector<8x1xf32> to vector<8x8xf32>
      %55 = arith.mulf %50, %54 : vector<8x8xf32>
      %56 = arith.truncf %55 : vector<8x8xf32> to vector<8x8xbf16>
      %c3_38 = arith.constant 3 : index
      %c0_39 = arith.constant 0 : index
      %c0_40 = arith.constant 0 : index
      %57 = vector.load %arg11[%c3_38, %c0_39, %c0_40] : memref<4x8x32xbf16, #tpu.memory_space<vmem>>, vector<1x8x32xbf16>
      %58 = vector.shape_cast %57 : vector<1x8x32xbf16> to vector<8x32xbf16>
      %cst_41 = arith.constant dense<0.000000e+00> : vector<8x32xf32>
      %59 = tpu.matmul %56, %58, %cst_41 {dimension_numbers = #tpu.dot_dimension_numbers<[1], [0], [0], [1], [0, 0, 1, 1], [], []>} : vector<8x8xbf16>, vector<8x32xbf16>, vector<8x32xf32> -> vector<8x32xf32>
      %60 = arith.addf %48, %59 : vector<8x32xf32>
      %c0_42 = arith.constant 0 : index
      %c0_43 = arith.constant 0 : index
      %61 = vector.load %arg12[%c0_42, %c0_43] : memref<1x32xf32, #tpu.memory_space<vmem>>, vector<1x32xf32>
      %62 = vector.broadcast %61 : vector<1x32xf32> to vector<8x32xf32>
      %63 = arith.addf %60, %62 : vector<8x32xf32>
      %c0_44 = arith.constant 0 : index
      %c0_45 = arith.constant 0 : index
      %c0_46 = arith.constant 0 : index
      %64 = vector.load %arg13[%c0_44, %c0_45, %c0_46] : memref<1x8x32xf32, #tpu.memory_space<vmem>>, vector<1x8x32xf32>
      %65 = vector.shape_cast %64 : vector<1x8x32xf32> to vector<8x32xf32>
      %66 = vector.shape_cast %63 : vector<8x32xf32> to vector<1x8x32xf32>
      tpu.vector_store %arg13[%c0_44, %c0_45, %c0_46], %66 {strides = array<i32>} : memref<1x8x32xf32, #tpu.memory_space<vmem>>, vector<1x8x32xf32>,
    } else {
    }
    return
  }
  func.func @transform_0(%arg0: i32, %arg1: i32, %arg2: i32) -> (i32, i32, i32) {
    %c0_i32 = arith.constant 0 : i32
    %c0_i32_0 = arith.constant 0 : i32
    return %arg0, %arg1, %c0_i32 : i32, i32, i32
  }
  func.func @transform_1(%arg0: i32, %arg1: i32, %arg2: i32) -> (i32, i32, i32) {
    %c0_i32 = arith.constant 0 : i32
    %c0_i32_0 = arith.constant 0 : i32
    return %arg0, %arg2, %c0_i32 : i32, i32, i32
  }
  func.func @transform_2(%arg0: i32, %arg1: i32, %arg2: i32) -> (i32, i32, i32) {
    %c0_i32 = arith.constant 0 : i32
    %c0_i32_0 = arith.constant 0 : i32
    %c0_i32_1 = arith.constant 0 : i32
    %c0_i32_2 = arith.constant 0 : i32
    return %c0_i32, %c0_i32_0, %c0_i32_1 : i32, i32, i32
  }
  func.func @transform_3(%arg0: i32, %arg1: i32, %arg2: i32) -> (i32, i32, i32) {
    %c0_i32 = arith.constant 0 : i32
    %c0_i32_0 = arith.constant 0 : i32
    %c0_i32_1 = arith.constant 0 : i32
    %c0_i32_2 = arith.constant 0 : i32
    return %c0_i32, %c0_i32_0, %c0_i32_1 : i32, i32, i32
  }
  func.func @transform_4(%arg0: i32, %arg1: i32, %arg2: i32) -> (i32, i32, i32) {
    %c0_i32 = arith.constant 0 : i32
    %c0_i32_0 = arith.constant 0 : i32
    %c0_i32_1 = arith.constant 0 : i32
    %c0_i32_2 = arith.constant 0 : i32
    return %c0_i32, %c0_i32_0, %c0_i32_1 : i32, i32, i32
  }
  func.func @transform_5(%arg0: i32, %arg1: i32, %arg2: i32) -> (i32, i32, i32) {
    %c0_i32 = arith.constant 0 : i32
    %c0_i32_0 = arith.constant 0 : i32
    %c0_i32_1 = arith.constant 0 : i32
    %c0_i32_2 = arith.constant 0 : i32
    return %c0_i32, %c0_i32_0, %c0_i32_1 : i32, i32, i32
  }
  func.func @transform_6(%arg0: i32, %arg1: i32, %arg2: i32) -> (i32, i32, i32) {
    %c0_i32 = arith.constant 0 : i32
    %c0_i32_0 = arith.constant 0 : i32
    %c0_i32_1 = arith.constant 0 : i32
    %c0_i32_2 = arith.constant 0 : i32
    return %c0_i32, %c0_i32_0, %c0_i32_1 : i32, i32, i32
  }
  func.func @transform_7(%arg0: i32, %arg1: i32, %arg2: i32) -> (i32, i32, i32) {
    %c0_i32 = arith.constant 0 : i32
    %c0_i32_0 = arith.constant 0 : i32
    %c0_i32_1 = arith.constant 0 : i32
    %c0_i32_2 = arith.constant 0 : i32
    return %c0_i32, %c0_i32_0, %c0_i32_1 : i32, i32, i32
  }
  func.func @transform_8(%arg0: i32, %arg1: i32, %arg2: i32) -> (i32, i32, i32) {
    %c0_i32 = arith.constant 0 : i32
    %c0_i32_0 = arith.constant 0 : i32
    %c0_i32_1 = arith.constant 0 : i32
    %c0_i32_2 = arith.constant 0 : i32
    return %c0_i32, %c0_i32_0, %c0_i32_1 : i32, i32, i32
  }
  func.func @transform_9(%arg0: i32, %arg1: i32, %arg2: i32) -> (i32, i32) {
    %c0_i32 = arith.constant 0 : i32
    %c0_i32_0 = arith.constant 0 : i32
    %c0_i32_1 = arith.constant 0 : i32
    return %c0_i32, %c0_i32_0 : i32, i32
  }
  func.func @transform_10(%arg0: i32, %arg1: i32, %arg2: i32) -> (i32, i32, i32) {
    %c0_i32 = arith.constant 0 : i32
    %c0_i32_0 = arith.constant 0 : i32
    return %arg0, %arg1, %c0_i32 : i32, i32, i32
  }
}

</mosaic_0001>

<bundles_post_ra>
// kernel: tpu_custom_call.1
= control target key start
LH: loop header
LB: loop body
LE: loop exit
PB: predicated region body
PF: predicated region fallthrough
CT: control target
= control target key end

     0   :  { %15 = vsyncpa [#allocation7], 0  ;;  %s1965_s0 = inlined_call_operand.vmem [shape: bf16[2,8,32], index: 0, kind: input, shape index: {}]   ;;  %s1966_s1 = inlined_call_operand.vmem [shape: bf16[2,8,32], index: 1, kind: input, shape index: {}]   ;;  %s1967_s2 = inlined_call_operand.vmem [shape: bf16[4,32,8], index: 2, kind: input, shape index: {}]   ;;  %s1968_s3 = inlined_call_operand.vmem [shape: f32[4,1,8], index: 3, kind: input, shape index: {}]   ;;  %s1969_s4 = inlined_call_operand.vmem [shape: bf16[2,32,8], index: 4, kind: input, shape index: {}]   ;;  %s1970_s5 = inlined_call_operand.vmem [shape: f32[2,1,8], index: 5, kind: input, shape index: {}]   ;;  %s1971_s6 = inlined_call_operand.vmem [shape: bf16[2,32,8], index: 6, kind: input, shape index: {}]   ;;  %s1972_s7 = inlined_call_operand.vmem [shape: f32[2,1,8], index: 7, kind: input, shape index: {}]   ;;  %s1973_s8 = inlined_call_operand.vmem [shape: bf16[4,8,32], index: 8, kind: input, shape index: {}]   ;;  %s1974_s9 = inlined_call_operand.vmem [shape: f32[1,32], index: 9, kind: input, shape index: {}]   ;;  %s1975_s10 = inlined_call_operand.hbm [shape: f32[2,8,32], index: 10, kind: output, shape index: {}]  }
   0x1   :  { %17 = vsyncpa [#allocation7 + $0x1], 0  ;;  %s1669_s13 = smov 0   ;;  %s1671_s14 = smov 0  }
   0x2   :  { %s1673_s15 = smov 0   ;;  %s1675_s16 = smov 0  }
   0x3   :  { %s1677_s17 = smov 0   ;;  %s1679_s18 = smov 0  }
   0x4 LB: > { %s1295_s19 = sadd.s32 4294967295, %s1608_s18   ;;  %s1296_s20 = sadd.s32 4294967294, %s1608_s18   ;;  %s1608_s18 = sphi %s1679_s18, %s23_s18   ;;  %s1604_s17 = sphi %s1677_s17, %s1985_s17   ;;  %s1600_s16 = sphi %s1675_s16, %s1984_s16   ;;  %s1596_s15 = sphi %s1673_s15, %s1983_s15   ;;  %s1592_s14 = sphi %s1671_s14, %s1982_s14   ;;  %s1588_s13 = sphi %s1669_s13, %s1981_s13  }
   0x5   : > { %s42_s21 = sadd.s32 1, %s1604_s17  ;;  %s275_s22 = sadd.s32 1, %s1596_s15 }
   0x6   : > { %p44_p0 = scmp.ge.s32.totalorder %s42_s21, 2  ;;  %p285_p1 = scmp.ne.s32.totalorder %s1596_s15, %s1592_s14 }
   0x7   : > { %p286_p2 = scmp.eq.s32.totalorder %s1295_s19, 1  ;;  %p291_p3 = scmp.ne.s32.totalorder %s1592_s14, %s1588_s13 }
   0x8   : > { %s1987_s21 = smov (%p44_p0, %s42_s21), 0  ;;  %p292_p5 = scmp.eq.s32.totalorder %s1296_s20, 1 }
   0x9   : > { %1977 = sst [smem:[#allocation9_spill]] %s1987_s21  ;;  %p1709_p4 = por %p286_p2, %p285_p1 }
   0xa   : > { %s270_s24 = ssub.s32 %s1604_s17, %s1987_s21  ;;  %p1299_p6 = scmp.ge.s32.totalorder %s1608_s18, 1 }
   0xb   : > { %p273_p7 = scmp.eq.s32.totalorder %s270_s24, 0  ;;  %p1716_p8 = por %p292_p5, %p291_p3 }
   0xc   : > { %p354_p9 = scmp.lt.s32.totalorder %s1608_s18, 3 }
   0xd   : > { %s1722_s26 = scalar_select %p273_p7, %s1596_s15, %s275_s22  }
   0xe   : > { %p355_p10 = pnand %p1299_p6, %p354_p9 }
   0xf   : > { %p401_p11 = scmp.lt.s32.totalorder (!%p355_p10), %s1600_s16, 1  ;;  %s1416_s27 = sshll.u32 (!%p355_p10), %s1600_s16, 3 }
  0x10   : > { %358 = sbr.rel (%p355_p10) target bundleno = 1091 (0x443), region = 60  ;;  %s1201_s11 = scalar_lea.hbm (!%p355_p10), %s1975_s10, %s1416_s27 }
  0x11   : > { %s1205_s21 = sshll.u32 (!%p355_p10), %s1201_s11, 4  ;;  %s1550_s11 = scalar_lea.hbm (!%p355_p10), %s1975_s10, 16  ;;  %s1206_s21 = int_to_ptr.hbm [resolvable:$true] %s1205_s21 }
  0x12   : > { %s1544_s27 = sshra.s32 (!%p355_p10), %s1206_s21, 4  ;;  %s1545_s27 = int_to_ptr.hbm [resolvable:$true] %s1544_s27 }
  0x13   : > { %s1546_s28 = scalar_lea.hbm (!%p355_p10), %s1545_s27, 8  ;;  %p1551_p1 = scmp.lt.s32.totalorder (!%p355_p10), %s1545_s27, %s1975_s10 }
  0x14   : > { %p1547_p12 = scmp.ne.s32.totalorder (!%p355_p10), %s1545_s27, %s1546_s28  ;;  %p1552_p2 = scmp.lt.s32.totalorder (!%p355_p10), %s1550_s11, %s1546_s28 }
  0x15   : > { %v1420_v0 = vld [vmem:[%s1967_s2 + $0x8] sm:$0xff]  ;;  %v1419_v1 = vld [vmem:[%s1967_s2] sm:$0xff]  ;;  %v1422_v3 = vld [vmem:[%s1967_s2 + $0x18] sm:$0xff]  ;;  %s402_s22 = scalar_select %p401_p11, %s1600_s16, 1  ;;  %vm441_vm0 = vcmask 261120   ;;  %vm459_vm1 = vcmask 60416   ;;  %v597_v42 = vlaneseq }
  0x16   : > { %v1428_v2 = vld [vmem:[%s1969_s4 + $0x8] sm:$0xff]  ;;  %451 = vmatpush.bf16.msra.mxu0 %v1420_v0  ;;  %v1421_v4 = vld [vmem:[%s1967_s2 + $0x10] sm:$0xff]  ;;  %489 = vmatpush.bf16.msra.mxu1 %v1422_v3  ;;  %v1427_v7 = vld [vmem:[%s1969_s4] sm:$0xff]  ;;  %vm584_vm2 = vcmask 64512   ;;  %v1610_v45 = vmov -1e+30   ;;  %p1548_p13 = pnand %p1547_p12, %p1709_p4  ;;  %p1553_p3 = por %p1552_p2, %p1551_p1 }
  0x17   : > { %v1424_v5 = vld [vmem:[%s1967_s2 + $0x28] sm:$0xff]  ;;  %s1301_s29 = sshll.u32 %s402_s22, 2  ;;  %v1423_v9 = vld [vmem:[%s1967_s2 + $0x20] sm:$0xff]  ;;  %v1426_v10 = vld [vmem:[%s1967_s2 + $0x38] sm:$0xff]  ;;  %v598_v43 = vshrl.u32 %v597_v42, 7  ;;  %v602_v44 = vand.u32 127, %v597_v42 }
  0x18   : > { %527 = vmatpush.bf16.msra.mxu2 %v1424_v5  ;;  %s407_s12 = scalar_lea.vmem %s1965_s0, %s1301_s29  ;;  %s414_s24 = scalar_lea.vmem %s1966_s1, %s1301_s29  ;;  %v1497_v11 = vld [vmem:[%s1968_s3] ss:$0 sm:$0xff]  ;;  %565 = vmatpush.bf16.msra.mxu3 %v1426_v10  ;;  %v1425_v12 = vld [vmem:[%s1967_s2 + $0x30] sm:$0xff]  ;;  %v1499_v18 = vld [vmem:[%s1968_s3 + $0x1] ss:$0 sm:$0xff]  ;;  %vm575_vm4 = vcmask 7168  }
  0x19   : > { %v420_v6 = vld [vmem:[%s407_s12] sm:$0xf]  ;;  %v1432_v25 = vld [vmem:[%s1969_s4 + $0x18] sm:$0xff]  ;;  %v1431_v28 = vld [vmem:[%s1969_s4 + $0x10] sm:$0xff]  ;;  %vm605_vm3 = vcmp.le.s32.totalorder %v602_v44, %v598_v43  ;;  %v1611_v50 = vmov -inf   ;;  %v1613_v3 = vmov 0.0   ;;  %p1549_p0 = pneg %p1548_p13 }
  0x1a   : > { %452 = vmatpush.bf16.msra.mxu0 %v1419_v1  ;;  %490 = vmatpush.bf16.msra.mxu1 %v1421_v4  ;;  %v1755_v8 = vld [vmem:[%s414_s24] sm:$0xf]  ;;  %v1800_v46 = vsel %vm605_vm3, 0.0, %v1610_v45  ;;  %v1430_v48 = vld [vmem:[%s1971_s6 + $0x8] sm:$0xff]  ;;  %576 = vst.msk [vmem:[#allocation3] sm:$0xff] %vm575_vm4, %v1611_v50  ;;  %vm735_vm5 = vcmask 1043456  }
  0x1b   : > { %v1498_v17 = vld [vmem:[%s1970_s5] ss:$0 sm:$0xff]  ;;  %v1500_v32 = vld [vmem:[%s1968_s3 + $0x2] ss:$0 sm:$0xff]  ;;  %v1501_v37 = vld [vmem:[%s1968_s3 + $0x3] ss:$0 sm:$0xff]  ;;  %p1554_p5 = pnand %p1553_p3, %p1549_p0 }
  0x1c   : > { %528 = vmatpush.bf16.msra.mxu2 %v1423_v9  ;;  %566 = vmatpush.bf16.msra.mxu3 %v1425_v12  ;;  %v1429_v51 = vld [vmem:[%s1971_s6] sm:$0xff]  ;;  %577 = vst.msk [vmem:[#allocation3 + $0x8] sm:$0xff] %vm575_vm4, %v1611_v50  ;;  %s398_s22 = sand.u32 1, %s1592_s14  }
  0x1d   : > { %1311 = vmatmul.msk.bf16.vlgmr.msra.gmra.mxu0 %vm441_vm0, %v420_v6  ;;  %1325 = vmatmul.msk.bf16.vlgmr.msra.gmra.mxu1 %vm441_vm0, %v420_v6  ;;  %578 = vst.msk [vmem:[#allocation3 + $0x10] sm:$0xff] %vm575_vm4, %v1611_v50  ;;  %v1502_v58 = vld [vmem:[%s1970_s5 + $0x1] ss:$0 sm:$0xff]  ;;  %s1300_s24 = sshll.u32 %s398_s22, 3  ;;  %s1190_s16 = scalar_lea.sflag [#allocation7], %s398_s22 }
  0x1e   : > { %637 = vmatpush.bf16.msrb.mxu0 %v1428_v2  ;;  %671 = vmatpush.bf16.msrb.mxu1 %v1430_v48  ;;  %579 = vst.msk [vmem:[#allocation3 + $0x18] sm:$0xff] %vm575_vm4, %v1611_v50  ;;  %v1612_v2 = vmov 0   ;;  %s400_s29 = scalar_lea.vmem [#allocation6], %s1300_s24 }
  0x1f   : > { %1339 = vmatmul.msk.bf16.vlgmr.msra.gmra.mxu2 %vm441_vm0, %v420_v6  ;;  %1353 = vmatmul.msk.bf16.vlgmr.msra.gmra.mxu3 %vm441_vm0, %v420_v6  ;;  %580 = vst.msk [vmem:[#allocation4] sm:$0xff] %vm575_vm4, %v1613_v3  ;;  %s1203_s20 = sshll.u32 %s400_s29, 4  ;;  %s1204_s20 = int_to_ptr.vmem [resolvable:$true] %s1203_s20 }
  0x20   : > { %1494 = vset.pattern.permute.xlu0 %v1612_v2  ;;  %1495 = vset.pattern.permute.xlu2 %v1612_v2  ;;  %581 = vst.msk [vmem:[#allocation4 + $0x8] sm:$0xff] %vm575_vm4, %v1613_v3 }
  0x21   : > { %1496 = vset.pattern.permute.xlu1 %v1612_v2  ;;  %582 = vst.msk [vmem:[#allocation4 + $0x10] sm:$0xff] %vm575_vm4, %v1613_v3  ;;  %v700_v4 = vld [vmem:[#allocation3] sm:$0xff] }
  0x22   : > { %638 = vmatpush.bf16.msrb.mxu0 %v1427_v7  ;;  %672 = vmatpush.bf16.msrb.mxu1 %v1429_v51  ;;  %583 = vst.msk [vmem:[#allocation4 + $0x18] sm:$0xff] %vm575_vm4, %v1613_v3 }
  0x23   : > { %585 = vst.msk [vmem:[#allocation5] sm:$0xff] %vm584_vm2, %v1613_v3  ;;  %v1839_v9 = vld [vmem:[#allocation3 + $0x8] sm:$0xff] }
  0x24   : > { %586 = vst.msk [vmem:[#allocation5 + $0x8] sm:$0xff] %vm584_vm2, %v1613_v3 }
  0x25   : > { %587 = vst.msk [vmem:[#allocation5 + $0x10] sm:$0xff] %vm584_vm2, %v1613_v3 }
  0x26   : > { %588 = vst.msk [vmem:[#allocation5 + $0x18] sm:$0xff] %vm584_vm2, %v1613_v3  ;;  %v716_v50 = vld [vmem:[#allocation4] sm:$0xff] }
  0x2d   : > { %1362 = vmatmul.msk.bf16.vlgmr.msrb.gmra.mxu0 %vm441_vm0, %v1755_v8  ;;  %1371 = vmatmul.msk.bf16.vlgmr.msrb.gmra.mxu1 %vm441_vm0, %v1755_v8 }
  0x9a   : > { %v454_v13 = vpop.f32.mrf.mxu0  ;;  %v492_v19 = vpop.f32.mrf.mxu1 }
  0x9b   : > { %v455_v14 = vadd.f32 %v1497_v11, %v454_v13  ;;  %v493_v20 = vadd.f32 %v1499_v18, %v492_v19 }
  0x9d   : > { %v458_v15 = vpack.c.bf16 %v455_v14, %v455_v14  ;;  %v496_v23 = vpack.c.bf16 %v493_v20, %v493_v20 }
  0x9f   : > { %460 = vst.msk [vmem:[#allocation2] sm:$0xf] %vm459_vm1, %v458_v15 }
  0xa0   : > { %498 = vst.msk [vmem:[#allocation2 + $0x4] sm:$0xf] %vm459_vm1, %v496_v23 }
  0xa2   : > { %v456_v16 = vpop.f32.mrf.mxu0  ;;  %v494_v27 = vpop.f32.mrf.mxu1 }
  0xa3   : > { %v530_v33 = vpop.f32.mrf.mxu2  ;;  %v568_v38 = vpop.f32.mrf.mxu3  ;;  %v1434_v27 = vld [vmem:[%s1971_s6 + $0x18] sm:$0xff] }
  0xa4   : > { %v531_v34 = vadd.f32 %v1500_v32, %v530_v33  ;;  %v569_v39 = vadd.f32 %v1501_v37, %v568_v38  ;;  %v1874_v37 = vld [vmem:[#allocation3 + $0x10] sm:$0xff] }
  0xa6   : > { %v679_v31 = vld [vmem:[#allocation2] sm:$0xf]  ;;  %v534_v35 = vpack.c.bf16 %v531_v34, %v531_v34  ;;  %v572_v40 = vpack.c.bf16 %v569_v39, %v569_v39 }
  0xa7   : > { %v756_v30 = vld [vmem:[#allocation2 + $0x4] sm:$0xf] }
  0xa8   : > { %536 = vst.msk [vmem:[#allocation2 + $0x8] sm:$0xf] %vm459_vm1, %v534_v35 }
  0xa9   : > { %574 = vst.msk [vmem:[#allocation2 + $0xc] sm:$0xf] %vm459_vm1, %v572_v40 }
  0xaa   : > { %v640_v21 = vpop.f32.mrf.mxu0 }
  0xab   : > { %v641_v22 = vadd.f32 %v1498_v17, %v640_v21  ;;  %v532_v36 = vpop.f32.mrf.mxu2  ;;  %v570_v41 = vpop.f32.mrf.mxu3  ;;  %v1503_v21 = vld [vmem:[%s1972_s7] ss:$0 sm:$0xff] }
  0xac   : > { %v994_v41 = vld [vmem:[#allocation3 + $0x18] sm:$0xff] }
  0xad   : > { %v644_v24 = vpack.c.bf16 %v641_v22, %v641_v22  ;;  %v674_v22 = vpop.f32.mrf.mxu1 }
  0xae   : > { %v675_v23 = vadd.f32 %v1503_v21, %v674_v22 }
  0xaf   : > { %v685_v26 = vsel %vm584_vm2, %v644_v24, 0  ;;  %v899_v1 = vld [vmem:[#allocation2 + $0x8] sm:$0xf] }
  0xb0   : > { %694 = vmatpush.bf16.xpose.msrb.mxu2 %v685_v26  ;;  %767 = vmatpush.bf16.xpose.msra.mxu0 %v685_v26  ;;  %v976_v0 = vld [vmem:[#allocation2 + $0xc] sm:$0xf]  ;;  %v678_v24 = vpack.c.bf16 %v675_v23, %v675_v23 }
  0xb2   : > { %v642_v29 = vpop.f32.mrf.mxu0 }
  0xb5   : > { %v676_v26 = vpop.f32.mrf.mxu1 }
  0xb7   : > { %1372 = vmatmul.msk.bf16.vlgmr.msrb.gmra.mxu2 %vm584_vm2, %v679_v31  ;;  %1374 = vmatmul.msk.bf16.vlgmr.msra.gmra.mxu0 %vm584_vm2, %v756_v30 }
  0xb8   : > { %854 = vmatpush.bf16.msra.mxu2 %v1432_v25  ;;  %v737_v25 = vsel %vm735_vm5, %v678_v24, 0 }
  0xb9   : > { %746 = vmatpush.bf16.msrb.mxu3 %v737_v25  ;;  %817 = vmatpush.bf16.msra.mxu1 %v737_v25 }
  0xbc   : > { %855 = vmatpush.bf16.msra.mxu2 %v1431_v28  ;;  %v1433_v28 = vld [vmem:[%s1971_s6 + $0x10] sm:$0xff] }
  0xbd   : > { %890 = vmatpush.bf16.msra.mxu3 %v1434_v27 }
  0xc1   : > { %891 = vmatpush.bf16.msra.mxu3 %v1433_v28  ;;  %v937_v28 = vld [vmem:[#allocation4 + $0x10] sm:$0xff] }
  0xc7   : > { %1389 = vmatmul.msk.bf16.vlgmr.msra.gmra.mxu2 %vm441_vm0, %v1755_v8 }
 0x134   : > { %v769_v47 = vpop.f32.mrf.mxu0 }
 0x135   : > { %v1806_v49 = vadd.f32 %v769_v47, %v1800_v46 }
 0x137   : > { %v775_v53 = vsel %vm584_vm2, %v1806_v49, -inf }
 0x138   : > { %776 = vmax.xlane.f32.xlu1 %v775_v53 }
 0x13a   : > { %v696_v52 = vpop.f32.mrf.mxu2 }
 0x13b   : > { %v1817_v54 = vadd.f32 %v696_v52, %v1800_v46 }
 0x13c   : > { %v771_v56 = vpop.f32.mrf.mxu0 }
 0x13d   : > { %v701_v55 = vsel %vm584_vm2, %v1817_v54, -inf }
 0x13e   : > { %702 = vmax.xlane.f32.xlu0 %v701_v55 }
 0x142   : > { %v698_v57 = vpop.f32.mrf.mxu2 }
 0x14a   : > { %v857_v59 = vpop.f32.mrf.mxu2 }
 0x14b   : > { %v858_v60 = vadd.f32 %v1502_v58, %v857_v59  ;;  %v724_v59 = vld [vmem:[#allocation5] sm:$0xff] }
 0x14d   : > { %v861_v61 = vpack.c.bf16 %v858_v60, %v858_v60 }
 0x14f   : > { %v904_v62 = vsel %vm584_vm2, %v861_v61, 0 }
 0x150   : > { %913 = vmatpush.bf16.xpose.msrb.mxu0 %v904_v62  ;;  %987 = vmatpush.bf16.xpose.msrb.mxu2 %v904_v62 }
 0x152   : > { %v859_v63 = vpop.f32.mrf.mxu2 }
 0x157   : > { %1404 = vmatmul.msk.bf16.vlgmr.msrb.gmra.mxu0 %vm584_vm2, %v899_v1  ;;  %1406 = vmatmul.msk.bf16.vlgmr.msrb.gmra.mxu2 %vm584_vm2, %v976_v0  ;;  %v1504_v1 = vld [vmem:[%s1972_s7 + $0x1] ss:$0 sm:$0xff] }
 0x1ab   : > { %v777_v10 = vpop.xlane.xlu1 %776 }
 0x1ac   : > { %v1842_v11 = vmax.f32 %v1839_v9, %v777_v10 }
 0x1ae   : > { %v779_v12 = vsub.f32 %v1839_v9, %v1842_v11  ;;  %825 = vst.msk [vmem:[#allocation3 + $0x8] sm:$0xff] %vm575_vm4, %v1842_v11 }
 0x1b0   : > { %v780_v23 = vmul.f32 1.442695, %v779_v12 }
 0x1b1   : > { %v703_v5 = vpop.xlane.xlu0 %702 }
 0x1b2   : > { %v704_v6 = vmax.f32 %v700_v4, %v703_v5 }
 0x1b4   : > { %v705_v7 = vsub.f32 %v700_v4, %v704_v6  ;;  %754 = vst.msk [vmem:[#allocation3] sm:$0xff] %vm575_vm4, %v704_v6  ;;  %710 = vperm.xlu0 %1494, %v704_v6  }
 0x1b6   : > { %v706_v35 = vmul.f32 1.442695, %v705_v7 }
 0x1d4   : > { %v915_v13 = vpop.f32.mrf.mxu0 }
 0x1d5   : > { %v1849_v14 = vadd.f32 %v915_v13, %v1800_v46 }
 0x1d7   : > { %v921_v15 = vsel %vm584_vm2, %v1849_v14, -inf }
 0x1d8   : > { %922 = vmax.xlane.f32.xlu2 %v921_v15 }
 0x1da   : > { %v989_v16 = vpop.f32.mrf.mxu2 }
 0x1db   : > { %v1854_v17 = vadd.f32 %v989_v16, %v1800_v46 }
 0x1dc   : > { %v917_v18 = vpop.f32.mrf.mxu0 }
 0x1dd   : > { %v995_v19 = vsel %vm584_vm2, %v1854_v17, -inf }
 0x1de   : > { %996 = vmax.xlane.f32.xlu1 %v995_v19 }
 0x1e2   : > { %v991_v20 = vpop.f32.mrf.mxu2 }
 0x1f0   : > { %784 = vperm.xlu2 %1495, %v1842_v11  }
 0x226   : > { %v711_v29 = vpop.permute.xlu0 %710 }
 0x227   : > { %v713_v30 = vsub.f32 %v1817_v54, %v711_v29 }
 0x229   : > { %v714_v31 = vmul.f32 1.442695, %v713_v30 }
 0x22b   : > { %1506 = vpow2.f32 %v714_v31 }
 0x22c   : > { %1508 = vpow2.f32 %v706_v35 }
 0x231   : > { %v1507_v32 = vpop.eup %1506 }
 0x232   : > { %v718_v33 = vsel %vm584_vm2, %v1507_v32, 0.0  ;;  %v731_v34 = vpack.c.bf16 %v1507_v32, %v1507_v32  ;;  %v1509_v36 = vpop.eup %1508  ;;  %v791_v32 = vld [vmem:[#allocation4 + $0x8] sm:$0xff] }
 0x233   : > { %719 = vadd.xlane.f32.xlu0 %v718_v33  ;;  %v717_v51 = vmul.f32 %v1509_v36, %v716_v50 }
 0x234   : > { %1373 = vmatmul.msk.bf16.vlgmr.msrb.gmra.mxu3 %vm584_vm2, %v731_v34 }
 0x244   : > { %1403 = vmatmul.msk.bf16.vlgmr.msra.gmra.mxu3 %vm441_vm0, %v1755_v8 }
 0x247   : > { %727 = vperm.xlu0 %1494, %v1509_v36  }
 0x24b   : > { %v923_v38 = vpop.xlane.xlu2 %922 }
 0x24c   : > { %v924_v39 = vmax.f32 %v1874_v37, %v923_v38 }
 0x24e   : > { %v925_v40 = vsub.f32 %v1874_v37, %v924_v39  ;;  %974 = vst.msk [vmem:[#allocation3 + $0x10] sm:$0xff] %vm575_vm4, %v924_v39  ;;  %930 = vperm.xlu2 %1495, %v924_v39   ;;  %v1011_v37 = vld [vmem:[#allocation4 + $0x18] sm:$0xff] }
 0x250   : > { %v926_v21 = vmul.f32 1.442695, %v925_v40 }
 0x251   : > { %v997_v42 = vpop.xlane.xlu1 %996 }
 0x252   : > { %v998_v43 = vmax.f32 %v994_v41, %v997_v42  ;;  %v1059_v42 = vld [vmem:[%s1973_s8] sm:$0xf] }
 0x253   : > { %v785_v44 = vpop.permute.xlu2 %784 }
 0x254   : > { %v999_v45 = vsub.f32 %v994_v41, %v998_v43  ;;  %1045 = vst.msk [vmem:[#allocation3 + $0x18] sm:$0xff] %vm575_vm4, %v998_v43  ;;  %v787_v8 = vsub.f32 %v1806_v49, %v785_v44  ;;  %1004 = vperm.xlu1 %1496, %v998_v43   ;;  %v1099_v44 = vsel %vm735_vm5, %v1059_v42, 0 }
 0x256   : > { %v788_v46 = vmul.f32 1.442695, %v787_v8  ;;  %v1000_v7 = vmul.f32 1.442695, %v999_v45  ;;  %v1019_v45 = vld [vmem:[#allocation5 + $0x18] sm:$0xff] }
 0x258   : > { %1510 = vpow2.f32 %v788_v46 }
 0x25e   : > { %v1511_v47 = vpop.eup %1510 }
 0x25f   : > { %v806_v48 = vpack.c.bf16 %v1511_v47, %v1511_v47  ;;  %v793_v63 = vsel %vm584_vm2, %v1511_v47, 0.0 }
 0x261   : > { %1375 = vmatmul.msk.bf16.vlgmr.msra.gmra.mxu1 %vm584_vm2, %v806_v48 }
 0x2a6   : > { %v720_v52 = vpop.xlane.xlu0 %719 }
 0x2a7   : > { %v721_v53 = vadd.f32 %v720_v52, %v717_v51  ;;  %v945_v52 = vld [vmem:[#allocation5 + $0x10] sm:$0xff] }
 0x2a8   : > { %v931_v54 = vpop.permute.xlu2 %930 }
 0x2a9   : > { %723 = vst.msk [vmem:[#allocation4] sm:$0xff] %vm575_vm4, %v721_v53  ;;  %v933_v55 = vsub.f32 %v1849_v14, %v931_v54 }
 0x2ab   : > { %v934_v56 = vmul.f32 1.442695, %v933_v55 }
 0x2ad   : > { %1512 = vpow2.f32 %v934_v56 }
 0x2b0   : > { %v1050_v25 = vld [vmem:[#allocation4] sm:$0xff] }
 0x2b3   : > { %v1513_v57 = vpop.eup %1512 }
 0x2b4   : > { %v939_v49 = vsel %vm584_vm2, %v1513_v57, 0.0  ;;  %v952_v14 = vpack.c.bf16 %v1513_v57, %v1513_v57  ;;  %v799_v57 = vld [vmem:[#allocation5 + $0x8] sm:$0xff] }
 0x2b5   : > { %940 = vadd.xlane.f32.xlu2 %v939_v49 }
 0x2b7   : > { %v748_v58 = vpop.f32.mrf.mxu3 }
 0x2b9   : > { %v728_v60 = vpop.permute.xlu0 %727 }
 0x2ba   : > { %v730_v61 = vmul.f32 %v728_v60, %v724_v59 }
 0x2bc   : > { %v752_v62 = vadd.f32 %v748_v58, %v730_v61 }
 0x2bd   : > { %794 = vadd.xlane.f32.xlu2 %v793_v63 }
 0x2be   : > { %753 = vst.msk [vmem:[#allocation5] sm:$0xff] %vm584_vm2, %v752_v62 }
 0x2bf   : > { %v750_v0 = vpop.f32.mrf.mxu3 }
 0x2c0   : > { %v1411_v0 = vld [vmem:[%s1973_s8 + $0x8] sm:$0xf] }
 0x2c5   : > { %v1049_v60 = vld [vmem:[#allocation5] sm:$0xff] }
 0x2c6   : > { %v1005_v2 = vpop.permute.xlu1 %1004 }
 0x2c7   : > { %v1007_v3 = vsub.f32 %v1854_v17, %v1005_v2  ;;  %v893_v4 = vpop.f32.mrf.mxu3  ;;  %v1413_v2 = vld [vmem:[%s1973_s8 + $0xc] sm:$0xf] }
 0x2c8   : > { %v894_v5 = vadd.f32 %v1504_v1, %v893_v4  ;;  %v1132_v1 = vsel %vm735_vm5, %v1411_v0, 0  ;;  %v1408_v4 = vld [vmem:[%s1973_s8 + $0x4] sm:$0xf] }
 0x2c9   : > { %v1008_v6 = vmul.f32 1.442695, %v1007_v3  ;;  %1141 = vmatpush.bf16.msra.mxu2 %v1132_v1  ;;  %v1166_v3 = vsel %vm735_vm5, %v1413_v2, 0 }
 0x2ca   : > { %v897_v10 = vpack.c.bf16 %v894_v5, %v894_v5  ;;  %v1080_v5 = vsel %vm735_vm5, %v1408_v4, 0 }
 0x2cb   : > { %1514 = vpow2.f32 %v1008_v6  ;;  %1089 = vmatpush.bf16.msra.mxu0 %v1080_v5 }
 0x2cc   : > { %v957_v13 = vsel %vm735_vm5, %v897_v10, 0  ;;  %1516 = vpow2.f32 %v1000_v7 }
 0x2cd   : > { %966 = vmatpush.bf16.msrb.mxu1 %v957_v13  ;;  %1037 = vmatpush.bf16.msrb.mxu3 %v957_v13  ;;  %1518 = vpow2.f32 %v926_v21 }
 0x2ce   : > { %1520 = vpow2.f32 %v780_v23 }
 0x2cf   : > { %v895_v15 = vpop.f32.mrf.mxu3  ;;  %1522 = vrcp.f32 %v1050_v25 }
 0x2d0   : > { %1405 = vmatmul.msk.bf16.vlgmr.msrb.gmra.mxu1 %vm584_vm2, %v952_v14 }
 0x2d1   : > { %v1515_v16 = vpop.eup %1514  ;;  %1108 = vmatpush.bf16.msra.mxu1 %v1099_v44  ;;  %1175 = vmatpush.bf16.msra.mxu3 %v1166_v3 }
 0x2d2   : > { %v1026_v18 = vpack.c.bf16 %v1515_v16, %v1515_v16  ;;  %v1013_v19 = vsel %vm584_vm2, %v1515_v16, 0.0  ;;  %v1517_v17 = vpop.eup %1516 }
 0x2d3   : > { %1014 = vadd.xlane.f32.xlu1 %v1013_v19  ;;  %v1519_v24 = vpop.eup %1518  ;;  %v1012_v38 = vmul.f32 %v1517_v17, %v1011_v37 }
 0x2d4   : > { %1407 = vmatmul.msk.bf16.vlgmr.msrb.gmra.mxu3 %vm584_vm2, %v1026_v18  ;;  %v1521_v26 = vpop.eup %1520  ;;  %v938_v29 = vmul.f32 %v1519_v24, %v937_v28  ;;  %v1505_v28 = vld [vmem:[%s1974_s9] ss:$0 sm:$0xff] }
 0x2d5   : > { %1022 = vperm.xlu2 %1495, %v1517_v17   ;;  %v1523_v27 = vpop.eup %1522  ;;  %v792_v33 = vmul.f32 %v1521_v26, %v791_v32 }
 0x2de   : > { %v819_v20 = vpop.f32.mrf.mxu1 }
 0x2e6   : > { %v821_v22 = vpop.f32.mrf.mxu1 }
 0x2ec   : > { %948 = vperm.xlu1 %1496, %v1519_v24  }
 0x2f4   : > { %802 = vperm.xlu1 %1496, %v1521_v26  }
 0x2fc   : > { %1054 = vperm.xlu1 %1496, %v1523_v27  }
 0x328   : > { %v941_v30 = vpop.xlane.xlu2 %940 }
 0x329   : > { %v942_v31 = vadd.f32 %v941_v30, %v938_v29 }
 0x32b   : > { %943 = vst.msk [vmem:[#allocation4 + $0x10] sm:$0xff] %vm575_vm4, %v942_v31 }
 0x330   : > { %v795_v34 = vpop.xlane.xlu2 %794 }
 0x331   : > { %v796_v9 = vadd.f32 %v795_v34, %v792_v33 }
 0x332   : > { %v1117_v11 = vld [vmem:[#allocation4 + $0x10] sm:$0xff] }
 0x333   : > { %797 = vst.msk [vmem:[#allocation4 + $0x8] sm:$0xff] %vm575_vm4, %v796_v9  ;;  %1524 = vrcp.f32 %v1117_v11 }
 0x338   : > { %v1023_v8 = vpop.permute.xlu2 %1022 }
 0x339   : > { %v1525_v12 = vpop.eup %1524  ;;  %v1025_v47 = vmul.f32 %v1023_v8, %v1019_v45 }
 0x33a   : > { %1121 = vperm.xlu0 %1494, %v1525_v12   ;;  %v1063_v35 = vld [vmem:[#allocation4 + $0x8] sm:$0xff] }
 0x33b   : > { %1526 = vrcp.f32 %v1063_v35 }
 0x341   : > { %v1527_v36 = vpop.eup %1526 }
 0x342   : > { %1067 = vperm.xlu0 %1494, %v1527_v36  }
 0x346   : > { %v1015_v39 = vpop.xlane.xlu1 %1014 }
 0x347   : > { %v1016_v40 = vadd.f32 %v1015_v39, %v1012_v38 }
 0x349   : > { %1017 = vst.msk [vmem:[#allocation4 + $0x18] sm:$0xff] %vm575_vm4, %v1016_v40 }
 0x34d   : > { %v968_v41 = vpop.f32.mrf.mxu1 }
 0x350   : > { %v1151_v43 = vld [vmem:[#allocation4 + $0x18] sm:$0xff] }
 0x351   : > { %1528 = vrcp.f32 %v1151_v43 }
 0x355   : > { %v970_v46 = vpop.f32.mrf.mxu1 }
 0x357   : > { %v1529_v48 = vpop.eup %1528  ;;  %v1039_v50 = vpop.f32.mrf.mxu3 }
 0x358   : > { %v1043_v51 = vadd.f32 %v1039_v50, %v1025_v47  ;;  %1155 = vperm.xlu2 %1495, %v1529_v48  }
 0x35a   : > { %1044 = vst.msk [vmem:[#allocation5 + $0x18] sm:$0xff] %vm584_vm2, %v1043_v51 }
 0x35e   : > { %v949_v53 = vpop.permute.xlu1 %948 }
 0x35f   : > { %v951_v54 = vmul.f32 %v949_v53, %v945_v52  ;;  %v1041_v55 = vpop.f32.mrf.mxu3 }
 0x361   : > { %v972_v56 = vadd.f32 %v968_v41, %v951_v54  ;;  %v1149_v15 = vld [vmem:[#allocation5 + $0x18] sm:$0xff] }
 0x363   : > { %973 = vst.msk [vmem:[#allocation5 + $0x10] sm:$0xff] %vm584_vm2, %v972_v56 }
 0x366   : > { %v803_v49 = vpop.permute.xlu1 %802 }
 0x367   : > { %v805_v58 = vmul.f32 %v803_v49, %v799_v57 }
 0x369   : > { %v823_v59 = vadd.f32 %v819_v20, %v805_v58 }
 0x36a   : > { %v1115_v6 = vld [vmem:[#allocation5 + $0x10] sm:$0xff] }
 0x36b   : > { %824 = vst.msk [vmem:[#allocation5 + $0x8] sm:$0xff] %vm584_vm2, %v823_v59 }
 0x36e   : > { %v1055_v61 = vpop.permute.xlu1 %1054 }
 0x36f   : > { %v1057_v62 = vmul.f32 %v1055_v61, %v1049_v60 }
 0x371   : > { %v1058_v63 = vpack.c.bf16 %v1057_v62, %v1057_v62 }
 0x372   : > { %v1061_v18 = vld [vmem:[#allocation5 + $0x8] sm:$0xff] }
 0x373   : > { %1410 = vmatmul.msk.bf16.vlgmr.msra.gmra.mxu1 %vm584_vm2, %v1058_v63 }
 0x3ac   : > { %v1122_v7 = vpop.permute.xlu0 %1121 }
 0x3ad   : > { %v1124_v10 = vmul.f32 %v1122_v7, %v1115_v6 }
 0x3af   : > { %v1125_v13 = vpack.c.bf16 %v1124_v10, %v1124_v10 }
 0x3b1   : > { %1412 = vmatmul.msk.bf16.vlgmr.msra.gmra.mxu2 %vm584_vm2, %v1125_v13 }
 0x3b2   : > { %v1156_v14 = vpop.permute.xlu2 %1155 }
 0x3b3   : > { %v1158_v16 = vmul.f32 %v1156_v14, %v1149_v15 }
 0x3b4   : > { %v1068_v19 = vpop.permute.xlu0 %1067 }
 0x3b5   : > { %v1159_v17 = vpack.c.bf16 %v1158_v16, %v1158_v16  ;;  %v1070_v20 = vmul.f32 %v1068_v19, %v1061_v18 }
 0x3b7   : > { %v1071_v21 = vpack.c.bf16 %v1070_v20, %v1070_v20  ;;  %1414 = vmatmul.msk.bf16.vlgmr.msra.gmra.mxu3 %vm584_vm2, %v1159_v17 }
 0x3b9   : > { %1409 = vmatmul.msk.bf16.vlgmr.msra.gmra.mxu0 %vm584_vm2, %v1071_v21 }
 0x3f0   : > { %v1110_v22 = vpop.f32.mrf.mxu1 }
 0x3f8   : > { %v1112_v23 = vpop.f32.mrf.mxu1 }
 0x434   : > { %v1143_v24 = vpop.f32.mrf.mxu2 }
 0x436   : > { %v1091_v25 = vpop.f32.mrf.mxu0 }
 0x437   : > { %v1111_v26 = vadd.f32 %v1110_v22, %v1091_v25 }
 0x439   : > { %v1147_v27 = vadd.f32 %v1143_v24, %v1111_v26 }
 0x43a   : > { %v1177_v29 = vpop.f32.mrf.mxu3 }
 0x43b   : > { %v1181_v30 = vadd.f32 %v1177_v29, %v1147_v27 }
 0x43c   : > { %v1145_v31 = vpop.f32.mrf.mxu2 }
 0x43d   : > { %v1186_v32 = vadd.f32 %v1505_v28, %v1181_v30 }
 0x43e   : > { %v1093_v33 = vpop.f32.mrf.mxu0 }
 0x43f   : > { %1188 = vst.msk [vmem:[%s400_s29] sm:$0xff] %vm441_vm0, %v1186_v32 }
 0x440   : > { %1557 = shalt.err (!%p1554_p5)
}
 0x441   : > { %1435 = dma.vmem_to_hbm [thread:$0]  (%p1709_p4), %s1204_s20, 128, %s1206_s21, %s1190_s16  }
 0x442   : > { %v1179_v34 = vpop.f32.mrf.mxu3 }
 0x443 PF: > { %p1441_p6 = scmp.ge.s32.totalorder %s1608_s18, 2  ;;  %s1217_s22 = sand.u32 1, %s1588_s13  }
 0x444   : > { %s1218_s29 = scalar_lea.sflag [#allocation7], %s1217_s22 }
 0x445   : > { %p1438_p7 = pnand %p1441_p6, %p1716_p8 }
 0x447   : > { %p1439_p9 = pneg %p1438_p7 }
 0x449   : > { %1583 = dma.done.wait (%p1439_p9), %s1218_s29, 128  }
 0x44a   : > { %1585 = vsyncadd (%p1439_p9), %s1218_s29, 4294967168  ;;  %s23_s18 = sadd.s32 1, %s1608_s18   ;;  %s1980_s23 = sld [smem:[#allocation9_spill]] }
 0x44b   : > { %p20_p10 = scmp.ge.s32.totalorder %s23_s18, 4   ;;  %s1981_s13 = smov %s1592_s14 }
 0x44c   : > { %s1982_s14 = smov %s1596_s15  ;;  %s1983_s15 = smov %s1722_s26 }
 0x44d   : > { %s1984_s16 = smov %s1604_s17  ;;  %22 = sbr.rel (!%p20_p10) target bundleno = 4 (0x4), region = 144 }
 0x450   : > { %s1985_s17 = smov %s1980_s23 }
 0x452   :  { %1224 = vsyncpa [#allocation7], 1 }
 0x453   :  { %1226 = vsyncpa [#allocation7 + $0x1], 1 }

</bundles_post_ra>
